<compile_context>
chip_gen: v5e
topology: v5e:2x2
jax: 0.10.0
libtpu: 0.0.40
codegen_flags: <defaults>
</compile_context>

<pallas_src>
import jax
import jax.numpy as jnp
import numpy as np
from jax.experimental import pallas as pl
from jax.experimental.pallas import tpu as pltpu

# ---- model hyper-params (small, consistent with the implied forward) -------
B = 2
C = 4
H = W = 16
P = 4                              # patch size
NPATCH = (H // P) * (W // P)       # 16
PATCH_DIM = C * P * P              # 64
D = 32                             # hidden dim
NHEAD = 4
DH = D // NHEAD                    # 8
MLP = 2 * D                        # 64
SEQ = NPATCH + 1                   # 17 (CLS + patches)
NUM_CLASSES = 2
LANES = 128                        # lane-dense packing width

# Row layout of the packed "vecs" array (all rows are 128 lanes wide).
_R_LN1G, _R_LN1B, _R_BQKV, _R_BO = 0, 1, 2, 3
_R_LN2G, _R_LN2B, _R_B1, _R_B2 = 4, 5, 6, 7
_R_LNFG, _R_LNFB, _R_BH = 8, 9, 10
_POS_ROW0 = 16                     # pos/cls/bpe table starts here (8-aligned)

# Row layout of the packed "mats" array (sublane-aligned offsets).
_M_WPE0, _M_WPE1 = 0, 64           # wpe   (64, 32)
_M_WQKV0, _M_WQKV1 = 64, 96        # wqkv  (32, 96)
_M_WO0, _M_WO1 = 96, 128           # wo    (32, 32)
_M_W10, _M_W11 = 128, 160          # w1    (32, 64)
_M_W20, _M_W21 = 160, 224          # w2    (64, 32)
_M_WH0, _M_WH1 = 224, 256          # wh    (32, 128) zero-padded beyond class 2
MROWS = 256


def _ln(x, g, b, eps=1e-5):
    mu = jnp.mean(x, axis=-1, keepdims=True)
    var = jnp.mean((x - mu) ** 2, axis=-1, keepdims=True)
    return (x - mu) * jax.lax.rsqrt(var + eps) * g + b


def vit_kernel(patches_ref, mats_ref, vecs_ref, out_ref):
    R = patches_ref.shape[0]           # padded token-row count (multiple of 8)
    nb = R // SEQ                      # number of batch elements packed in rows

    # ---- unpack packed weights (static, sublane-aligned slices) ----
    wpe = mats_ref[_M_WPE0:_M_WPE1, 0:D]
    wqkv = mats_ref[_M_WQKV0:_M_WQKV1, 0:3 * D]
    wo = mats_ref[_M_WO0:_M_WO1, 0:D]
    w1 = mats_ref[_M_W10:_M_W11, 0:MLP]
    w2 = mats_ref[_M_W20:_M_W21, 0:D]
    whp = mats_ref[_M_WH0:_M_WH1, :]                     # (D, 128) lane-dense

    posb = vecs_ref[_POS_ROW0:_POS_ROW0 + R, 0:D]        # cls/pos/bpe folded
    ln1g = vecs_ref[_R_LN1G:_R_LN1G + 1, 0:D]
    ln1b = vecs_ref[_R_LN1B:_R_LN1B + 1, 0:D]
    bqkv = vecs_ref[_R_BQKV:_R_BQKV + 1, 0:3 * D]
    bo = vecs_ref[_R_BO:_R_BO + 1, 0:D]
    ln2g = vecs_ref[_R_LN2G:_R_LN2G + 1, 0:D]
    ln2b = vecs_ref[_R_LN2B:_R_LN2B + 1, 0:D]
    b1 = vecs_ref[_R_B1:_R_B1 + 1, 0:MLP]
    b2 = vecs_ref[_R_B2:_R_B2 + 1, 0:D]
    lnfg = vecs_ref[_R_LNFG:_R_LNFG + 1, 0:D]
    lnfb = vecs_ref[_R_LNFB:_R_LNFB + 1, 0:D]
    bhp = vecs_ref[_R_BH:_R_BH + 1, :]                   # (1, 128)

    # ---- patch embedding + CLS token + positional embedding (fused) ----
    tok = jnp.dot(patches_ref[...], wpe,
                  preferred_element_type=jnp.float32) + posb        # (R, D)

    # ---- pre-LN multi-head self-attention with fused QKV matmul ----
    h1 = _ln(tok, ln1g, ln1b)
    qkv = jnp.dot(h1, wqkv, preferred_element_type=jnp.float32) + bqkv  # (R, 3D)
    q = qkv[:, 0:D]
    k = qkv[:, D:2 * D]
    v = qkv[:, 2 * D:3 * D]
    kt = k.T

    # Block-diagonal per-batch mask; also masks padded key rows.  Additive
    # -1e30 (not -inf) keeps padded query rows NaN-free; their outputs are
    # never read back.
    r = jax.lax.broadcasted_iota(jnp.int32, (R, R), 0)
    c = jax.lax.broadcasted_iota(jnp.int32, (R, R), 1)
    same = jnp.zeros((R, R), jnp.bool_)
    for bi in range(nb):
        rin = (r >= bi * SEQ) & (r < (bi + 1) * SEQ)
        cin = (c >= bi * SEQ) & (c < (bi + 1) * SEQ)
        same = same | (rin & cin)
    smask = jnp.where(same, 0.0, -1e30).astype(jnp.float32)

    # Per-head column masks (equivalent to sliced per-head attention, avoids
    # in-kernel head reshapes/transposes).
    col = jax.lax.broadcasted_iota(jnp.int32, (R, D), 1)
    scale = 1.0 / (DH ** 0.5)
    attn = jnp.zeros((R, D), jnp.float32)
    for hd in range(NHEAD):
        m = ((col >= hd * DH) & (col < (hd + 1) * DH)).astype(jnp.float32)
        s = jnp.dot(q * m, kt, preferred_element_type=jnp.float32) * scale + smask
        s = s - jnp.max(s, axis=-1, keepdims=True)
        pexp = jnp.exp(s)
        pexp = pexp * pl.reciprocal(jnp.sum(pexp, axis=-1, keepdims=True),
                                    approx=True)
        attn = attn + jnp.dot(pexp, v * m, preferred_element_type=jnp.float32)

    tok = tok + jnp.dot(attn, wo, preferred_element_type=jnp.float32) + bo

    # ---- MLP block ----
    h2 = _ln(tok, ln2g, ln2b)
    mlp = jnp.dot(h2, w1, preferred_element_type=jnp.float32) + b1
    mlp = jax.nn.gelu(mlp, approximate=True)
    tok = tok + jnp.dot(mlp, w2, preferred_element_type=jnp.float32) + b2

    # ---- final LN + lane-dense head on all rows (CLS rows sliced outside) ----
    tok = _ln(tok, lnfg, lnfb)
    out_ref[...] = jnp.dot(tok, whp, preferred_element_type=jnp.float32) + bhp


def extract_patches(x):
    # x: (B, C, H, W) NCHW -> (B, NPATCH, C*P*P), flattened as (C, P, P) per
    # patch, matching nn.Conv2d(kernel=stride=P) weight flattening.
    b = x.shape[0]
    x = x.reshape(b, C, H // P, P, W // P, P)
    x = x.transpose(0, 2, 4, 1, 3, 5)                # (B, H/P, W/P, C, P, P)
    return x.reshape(b, NPATCH, PATCH_DIM)


def _round_up(n, m):
    return ((n + m - 1) // m) * m


def vit_forward(x, p):
    b = x.shape[0]
    nrows = _round_up(b * SEQ, 8)

    # Token input: [zero CLS row ; patches] per batch, padded to nrows rows.
    patches = extract_patches(x).astype(jnp.float32)
    zrow = jnp.zeros((b, 1, PATCH_DIM), jnp.float32)
    pp = jnp.concatenate([zrow, patches], axis=1).reshape(b * SEQ, PATCH_DIM)
    patches_pad = jnp.zeros((nrows, PATCH_DIM), jnp.float32).at[:b * SEQ].set(pp)

    # Packed weight matrices (fused QKV, lane-dense padded head).
    wqkv = jnp.concatenate([p["wq"], p["wk"], p["wv"]], axis=1)      # (D, 3D)
    bqkv = jnp.concatenate([p["bq"], p["bk"], p["bv"]], axis=1)      # (1, 3D)
    mats = jnp.zeros((MROWS, LANES), jnp.float32)
    mats = mats.at[_M_WPE0:_M_WPE1, 0:D].set(p["wpe"])
    mats = mats.at[_M_WQKV0:_M_WQKV1, 0:3 * D].set(wqkv)
    mats = mats.at[_M_WO0:_M_WO1, 0:D].set(p["wo"])
    mats = mats.at[_M_W10:_M_W11, 0:MLP].set(p["w1"])
    mats = mats.at[_M_W20:_M_W21, 0:D].set(p["w2"])
    mats = mats.at[_M_WH0:_M_WH1, 0:NUM_CLASSES].set(p["wh"])

    # Packed vectors: fold CLS token + patch-embed bias into the pos table.
    pos_adj = p["pos"] + p["bpe"]                     # patch rows get bpe
    pos_adj = pos_adj.at[0].set(p["pos"][0] + p["cls"][0])   # CLS row: cls+pos
    posb = jnp.tile(pos_adj, (b, 1))                  # (b*SEQ, D)

    vrows = _POS_ROW0 + nrows
    vecs = jnp.zeros((vrows, LANES), jnp.float32)
    vecs = vecs.at[_POS_ROW0:_POS_ROW0 + b * SEQ, 0:D].set(posb)
    vecs = vecs.at[_R_LN1G, 0:D].set(p["ln1g"][0])
    vecs = vecs.at[_R_LN1B, 0:D].set(p["ln1b"][0])
    vecs = vecs.at[_R_BQKV, 0:3 * D].set(bqkv[0])
    vecs = vecs.at[_R_BO, 0:D].set(p["bo"][0])
    vecs = vecs.at[_R_LN2G, 0:D].set(p["ln2g"][0])
    vecs = vecs.at[_R_LN2B, 0:D].set(p["ln2b"][0])
    vecs = vecs.at[_R_B1, 0:MLP].set(p["b1"][0])
    vecs = vecs.at[_R_B2, 0:D].set(p["b2"][0])
    vecs = vecs.at[_R_LNFG, 0:D].set(p["lnfg"][0])
    vecs = vecs.at[_R_LNFB, 0:D].set(p["lnfb"][0])
    vecs = vecs.at[_R_BH, 0:NUM_CLASSES].set(p["bh"][0])

    out = pl.pallas_call(
        vit_kernel,
        out_shape=jax.ShapeDtypeStruct((nrows, LANES), jnp.float32),
        grid_spec=pltpu.PrefetchScalarGridSpec(
            num_scalar_prefetch=0,
            grid=(1,),
            in_specs=[
                pl.BlockSpec((nrows, PATCH_DIM), lambda i: (0, 0)),
                pl.BlockSpec((MROWS, LANES), lambda i: (0, 0)),
                pl.BlockSpec((vrows, LANES), lambda i: (0, 0)),
            ],
            out_specs=pl.BlockSpec((nrows, LANES), lambda i: (0, 0)),
        ),
        compiler_params=pltpu.CompilerParams(
            dimension_semantics=("arbitrary",)),
    )(patches_pad, mats, vecs)

    cls_rows = np.arange(b) * SEQ                     # CLS row per batch item
    return out[cls_rows, :NUM_CLASSES]                # (B, NUM_CLASSES)


def init_params(key):
    ks = jax.random.split(key, 12)

    def nrm(k, shape):
        return (jax.random.normal(k, shape, jnp.float32) * 0.02).astype(jnp.float32)

    p = {
        "cls": nrm(ks[0], (1, D)),
        "pos": nrm(ks[1], (SEQ, D)),
        "wpe": nrm(ks[2], (PATCH_DIM, D)), "bpe": jnp.zeros((1, D), jnp.float32),
        "ln1g": jnp.ones((1, D), jnp.float32), "ln1b": jnp.zeros((1, D), jnp.float32),
        "wq": nrm(ks[3], (D, D)), "bq": jnp.zeros((1, D), jnp.float32),
        "wk": nrm(ks[4], (D, D)), "bk": jnp.zeros((1, D), jnp.float32),
        "wv": nrm(ks[5], (D, D)), "bv": jnp.zeros((1, D), jnp.float32),
        "wo": nrm(ks[6], (D, D)), "bo": jnp.zeros((1, D), jnp.float32),
        "ln2g": jnp.ones((1, D), jnp.float32), "ln2b": jnp.zeros((1, D), jnp.float32),
        "w1": nrm(ks[7], (D, MLP)), "b1": jnp.zeros((1, MLP), jnp.float32),
        "w2": nrm(ks[8], (MLP, D)), "b2": jnp.zeros((1, D), jnp.float32),
        "lnfg": jnp.ones((1, D), jnp.float32), "lnfb": jnp.zeros((1, D), jnp.float32),
        "wh": nrm(ks[9], (D, NUM_CLASSES)), "bh": jnp.zeros((1, NUM_CLASSES), jnp.float32),
    }
    return p


def vit_reference(x, p):
    # Pure-JAX reference for correctness checking.
    with jax.default_matmul_precision("highest"):
        b = x.shape[0]
        patches = extract_patches(x).astype(jnp.float32)
        emb = patches @ p["wpe"] + p["bpe"]                       # (B, N, D)
        cls = jnp.broadcast_to(p["cls"][None], (b, 1, D))
        tok = jnp.concatenate([cls, emb], axis=1) + p["pos"][None]

        h1 = _ln(tok, p["ln1g"], p["ln1b"])
        q = h1 @ p["wq"] + p["bq"]
        k = h1 @ p["wk"] + p["bk"]
        v = h1 @ p["wv"] + p["bv"]

        def split(t):
            return t.reshape(b, SEQ, NHEAD, DH).transpose(0, 2, 1, 3)

        qh, kh, vh = split(q), split(k), split(v)
        s = jnp.einsum("bhqd,bhkd->bhqk", qh, kh) / jnp.sqrt(jnp.float32(DH))
        a = jax.nn.softmax(s, axis=-1)
        o = jnp.einsum("bhqk,bhkd->bhqd", a, vh)
        o = o.transpose(0, 2, 1, 3).reshape(b, SEQ, D)
        tok = tok + (o @ p["wo"] + p["bo"])

        h2 = _ln(tok, p["ln2g"], p["ln2b"])
        m = jax.nn.gelu(h2 @ p["w1"] + p["b1"], approximate=True)
        tok = tok + (m @ p["w2"] + p["b2"])

        tok = _ln(tok, p["lnfg"], p["lnfb"])
        return tok[:, 0, :] @ p["wh"] + p["bh"]                   # (B, NUM_CLASSES)


if __name__ == "__main__":
    key = jax.random.PRNGKey(0)
    kx, kp = jax.random.split(key)
    x = jax.random.normal(kx, (B, C, H, W), jnp.float32)          # NCHW, like PyTorch
    params = init_params(kp)

    fwd = jax.jit(vit_forward)
    logits = jax.block_until_ready(fwd(x, params))
    ref = jax.block_until_ready(vit_reference(x, params))

    assert logits.shape == (B, NUM_CLASSES), logits.shape
    np.testing.assert_allclose(np.asarray(logits), np.asarray(ref),
                               rtol=2e-3, atol=2e-3)
    print("KERNEL_OK")
</pallas_src>

<mosaic_0001>
module attributes {stable_mosaic.version = 11 : i64} {
  func.func @vit_kernel(%arg0: i32, %arg1: memref<40x64xf32, #tpu.memory_space<vmem>>, %arg2: memref<256x128xf32, #tpu.memory_space<vmem>>, %arg3: memref<56x128xf32, #tpu.memory_space<vmem>>, %arg4: memref<40x128xf32, #tpu.memory_space<vmem>>) attributes {dimension_semantics = [#tpu.dimension_semantics<arbitrary>], iteration_bounds = array<i64: 1>, scalar_prefetch = 0 : i64, scratch_operands = 0 : i64, tpu.core_type = #tpu.core_type<tc>, window_params = [{pipeline_mode = #tpu.pipeline_mode<synchronous>, transform_indices = @transform_0, window_bounds = array<i64: 40, 64>}, {pipeline_mode = #tpu.pipeline_mode<synchronous>, transform_indices = @transform_1, window_bounds = array<i64: 256, 128>}, {pipeline_mode = #tpu.pipeline_mode<synchronous>, transform_indices = @transform_2, window_bounds = array<i64: 56, 128>}, {pipeline_mode = #tpu.pipeline_mode<synchronous>, transform_indices = @transform_3, window_bounds = array<i64: 40, 128>}]} {
    %c0 = arith.constant 0 : index
    %c0_0 = arith.constant 0 : index
    %0 = vector.load %arg2[%c0, %c0_0] : memref<256x128xf32, #tpu.memory_space<vmem>>, vector<64x32xf32>
    %c64 = arith.constant 64 : index
    %c0_1 = arith.constant 0 : index
    %1 = vector.load %arg2[%c64, %c0_1] : memref<256x128xf32, #tpu.memory_space<vmem>>, vector<32x96xf32>
    %c96 = arith.constant 96 : index
    %c0_2 = arith.constant 0 : index
    %2 = vector.load %arg2[%c96, %c0_2] : memref<256x128xf32, #tpu.memory_space<vmem>>, vector<32x32xf32>
    %c128 = arith.constant 128 : index
    %c0_3 = arith.constant 0 : index
    %3 = vector.load %arg2[%c128, %c0_3] : memref<256x128xf32, #tpu.memory_space<vmem>>, vector<32x64xf32>
    %c160 = arith.constant 160 : index
    %c0_4 = arith.constant 0 : index
    %4 = vector.load %arg2[%c160, %c0_4] : memref<256x128xf32, #tpu.memory_space<vmem>>, vector<64x32xf32>
    %c224 = arith.constant 224 : index
    %c0_5 = arith.constant 0 : index
    %5 = vector.load %arg2[%c224, %c0_5] : memref<256x128xf32, #tpu.memory_space<vmem>>, vector<32x128xf32>
    %c16 = arith.constant 16 : index
    %c0_6 = arith.constant 0 : index
    %6 = vector.load %arg3[%c16, %c0_6] : memref<56x128xf32, #tpu.memory_space<vmem>>, vector<40x32xf32>
    %c0_7 = arith.constant 0 : index
    %c0_8 = arith.constant 0 : index
    %7 = vector.load %arg3[%c0_7, %c0_8] : memref<56x128xf32, #tpu.memory_space<vmem>>, vector<1x32xf32>
    %c1 = arith.constant 1 : index
    %c0_9 = arith.constant 0 : index
    %8 = vector.load %arg3[%c1, %c0_9] : memref<56x128xf32, #tpu.memory_space<vmem>>, vector<1x32xf32>
    %c2 = arith.constant 2 : index
    %c0_10 = arith.constant 0 : index
    %9 = vector.load %arg3[%c2, %c0_10] : memref<56x128xf32, #tpu.memory_space<vmem>>, vector<1x96xf32>
    %c3 = arith.constant 3 : index
    %c0_11 = arith.constant 0 : index
    %10 = vector.load %arg3[%c3, %c0_11] : memref<56x128xf32, #tpu.memory_space<vmem>>, vector<1x32xf32>
    %c4 = arith.constant 4 : index
    %c0_12 = arith.constant 0 : index
    %11 = vector.load %arg3[%c4, %c0_12] : memref<56x128xf32, #tpu.memory_space<vmem>>, vector<1x32xf32>
    %c5 = arith.constant 5 : index
    %c0_13 = arith.constant 0 : index
    %12 = vector.load %arg3[%c5, %c0_13] : memref<56x128xf32, #tpu.memory_space<vmem>>, vector<1x32xf32>
    %c6 = arith.constant 6 : index
    %c0_14 = arith.constant 0 : index
    %13 = vector.load %arg3[%c6, %c0_14] : memref<56x128xf32, #tpu.memory_space<vmem>>, vector<1x64xf32>
    %c7 = arith.constant 7 : index
    %c0_15 = arith.constant 0 : index
    %14 = vector.load %arg3[%c7, %c0_15] : memref<56x128xf32, #tpu.memory_space<vmem>>, vector<1x32xf32>
    %c8 = arith.constant 8 : index
    %c0_16 = arith.constant 0 : index
    %15 = vector.load %arg3[%c8, %c0_16] : memref<56x128xf32, #tpu.memory_space<vmem>>, vector<1x32xf32>
    %c9 = arith.constant 9 : index
    %c0_17 = arith.constant 0 : index
    %16 = vector.load %arg3[%c9, %c0_17] : memref<56x128xf32, #tpu.memory_space<vmem>>, vector<1x32xf32>
    %c10 = arith.constant 10 : index
    %c0_18 = arith.constant 0 : index
    %17 = vector.load %arg3[%c10, %c0_18] : memref<56x128xf32, #tpu.memory_space<vmem>>, vector<1x128xf32>
    %c0_19 = arith.constant 0 : index
    %c0_20 = arith.constant 0 : index
    %18 = vector.load %arg1[%c0_19, %c0_20] : memref<40x64xf32, #tpu.memory_space<vmem>>, vector<40x64xf32>
    %cst = arith.constant dense<0.000000e+00> : vector<40x32xf32>
    %19 = tpu.matmul %18, %0, %cst {dimension_numbers = #tpu.dot_dimension_numbers<[1], [0], [0], [1], [0, 0, 1, 1], [], []>} : vector<40x64xf32>, vector<64x32xf32>, vector<40x32xf32> -> vector<40x32xf32>
    %20 = arith.addf %19, %6 : vector<40x32xf32>
    %cst_21 = arith.constant dense<0.000000e+00> : vector<40xf32>
    %21 = vector.multi_reduction <add>, %20, %cst_21 [1] : vector<40x32xf32> to vector<40xf32>
    %22 = vector.shape_cast %21 : vector<40xf32> to vector<40x1xf32>
    %cst_22 = arith.constant 3.200000e+01 : f32
    %23 = vector.broadcast %cst_22 : f32 to vector<40x1xf32>
    %24 = arith.divf %22, %23 : vector<40x1xf32>
    %25 = vector.broadcast %24 : vector<40x1xf32> to vector<40x32xf32>
    %26 = arith.subf %20, %25 : vector<40x32xf32>
    %27 = arith.mulf %26, %26 : vector<40x32xf32>
    %cst_23 = arith.constant dense<0.000000e+00> : vector<40xf32>
    %28 = vector.multi_reduction <add>, %27, %cst_23 [1] : vector<40x32xf32> to vector<40xf32>
    %29 = vector.shape_cast %28 : vector<40xf32> to vector<40x1xf32>
    %cst_24 = arith.constant 3.200000e+01 : f32
    %30 = vector.broadcast %cst_24 : f32 to vector<40x1xf32>
    %31 = arith.divf %29, %30 : vector<40x1xf32>
    %32 = vector.broadcast %24 : vector<40x1xf32> to vector<40x32xf32>
    %33 = arith.subf %20, %32 : vector<40x32xf32>
    %cst_25 = arith.constant 9.99999974E-6 : f32
    %34 = vector.broadcast %cst_25 : f32 to vector<40x1xf32>
    %35 = arith.addf %31, %34 : vector<40x1xf32>
    %36 = math.rsqrt %35 : vector<40x1xf32>
    %37 = vector.broadcast %36 : vector<40x1xf32> to vector<40x32xf32>
    %38 = arith.mulf %33, %37 : vector<40x32xf32>
    %39 = vector.broadcast %7 : vector<1x32xf32> to vector<40x32xf32>
    %40 = arith.mulf %38, %39 : vector<40x32xf32>
    %41 = vector.broadcast %8 : vector<1x32xf32> to vector<40x32xf32>
    %42 = arith.addf %40, %41 : vector<40x32xf32>
    %cst_26 = arith.constant dense<0.000000e+00> : vector<40x96xf32>
    %43 = tpu.matmul %42, %1, %cst_26 {dimension_numbers = #tpu.dot_dimension_numbers<[1], [0], [0], [1], [0, 0, 1, 1], [], []>} : vector<40x32xf32>, vector<32x96xf32>, vector<40x96xf32> -> vector<40x96xf32>
    %44 = vector.broadcast %9 : vector<1x96xf32> to vector<40x96xf32>
    %45 = arith.addf %43, %44 : vector<40x96xf32>
    %46 = vector.extract_strided_slice %45 {offsets = [0, 0], sizes = [40, 32], strides = [1, 1]} : vector<40x96xf32> to vector<40x32xf32>
    %47 = vector.extract_strided_slice %45 {offsets = [0, 32], sizes = [40, 32], strides = [1, 1]} : vector<40x96xf32> to vector<40x32xf32>
    %48 = vector.extract_strided_slice %45 {offsets = [0, 64], sizes = [40, 32], strides = [1, 1]} : vector<40x96xf32> to vector<40x32xf32>
    %49 = tpu.transpose %47, [1, 0] : vector<40x32xf32> -> vector<32x40xf32>
    %50 = tpu.iota {dimensions = array<i32: 0>} : vector<40x40xi32>
    %51 = tpu.iota {dimensions = array<i32: 1>} : vector<40x40xi32>
    %false = arith.constant false
    %52 = vector.broadcast %false : i1 to vector<40x40xi1>
    %c0_i32 = arith.constant 0 : i32
    %53 = vector.broadcast %c0_i32 : i32 to vector<40x40xi32>
    %54 = arith.cmpi sge, %50, %53 : vector<40x40xi32>
    %c17_i32 = arith.constant 17 : i32
    %55 = vector.broadcast %c17_i32 : i32 to vector<40x40xi32>
    %56 = arith.cmpi slt, %50, %55 : vector<40x40xi32>
    %57 = arith.andi %54, %56 : vector<40x40xi1>
    %c0_i32_27 = arith.constant 0 : i32
    %58 = vector.broadcast %c0_i32_27 : i32 to vector<40x40xi32>
    %59 = arith.cmpi sge, %51, %58 : vector<40x40xi32>
    %c17_i32_28 = arith.constant 17 : i32
    %60 = vector.broadcast %c17_i32_28 : i32 to vector<40x40xi32>
    %61 = arith.cmpi slt, %51, %60 : vector<40x40xi32>
    %62 = arith.andi %59, %61 : vector<40x40xi1>
    %63 = arith.andi %57, %62 : vector<40x40xi1>
    %64 = arith.ori %52, %63 : vector<40x40xi1>
    %c17_i32_29 = arith.constant 17 : i32
    %65 = vector.broadcast %c17_i32_29 : i32 to vector<40x40xi32>
    %66 = arith.cmpi sge, %50, %65 : vector<40x40xi32>
    %c34_i32 = arith.constant 34 : i32
    %67 = vector.broadcast %c34_i32 : i32 to vector<40x40xi32>
    %68 = arith.cmpi slt, %50, %67 : vector<40x40xi32>
    %69 = arith.andi %66, %68 : vector<40x40xi1>
    %c17_i32_30 = arith.constant 17 : i32
    %70 = vector.broadcast %c17_i32_30 : i32 to vector<40x40xi32>
    %71 = arith.cmpi sge, %51, %70 : vector<40x40xi32>
    %c34_i32_31 = arith.constant 34 : i32
    %72 = vector.broadcast %c34_i32_31 : i32 to vector<40x40xi32>
    %73 = arith.cmpi slt, %51, %72 : vector<40x40xi32>
    %74 = arith.andi %71, %73 : vector<40x40xi1>
    %75 = arith.andi %69, %74 : vector<40x40xi1>
    %76 = arith.ori %64, %75 : vector<40x40xi1>
    %cst_32 = arith.constant 0.000000e+00 : f32
    %cst_33 = arith.constant -1.000000e+30 : f32
    %77 = vector.broadcast %cst_32 : f32 to vector<40x40xf32>
    %78 = vector.broadcast %cst_33 : f32 to vector<40x40xf32>
    %79 = arith.select %76, %77, %78 : vector<40x40xi1>, vector<40x40xf32>
    %80 = tpu.iota {dimensions = array<i32: 1>} : vector<40x32xi32>
    %cst_34 = arith.constant 0.000000e+00 : f32
    %81 = vector.broadcast %cst_34 : f32 to vector<40x32xf32>
    %c0_i32_35 = arith.constant 0 : i32
    %82 = vector.broadcast %c0_i32_35 : i32 to vector<40x32xi32>
    %83 = arith.cmpi sge, %80, %82 : vector<40x32xi32>
    %c8_i32 = arith.constant 8 : i32
    %84 = vector.broadcast %c8_i32 : i32 to vector<40x32xi32>
    %85 = arith.cmpi slt, %80, %84 : vector<40x32xi32>
    %86 = arith.andi %83, %85 : vector<40x32xi1>
    %87 = arith.extui %86 : vector<40x32xi1> to vector<40x32xi32>
    %88 = arith.sitofp %87 : vector<40x32xi32> to vector<40x32xf32>
    %89 = arith.mulf %46, %88 : vector<40x32xf32>
    %cst_36 = arith.constant dense<0.000000e+00> : vector<40x40xf32>
    %90 = tpu.matmul %89, %49, %cst_36 {dimension_numbers = #tpu.dot_dimension_numbers<[1], [0], [0], [1], [0, 0, 1, 1], [], []>} : vector<40x32xf32>, vector<32x40xf32>, vector<40x40xf32> -> vector<40x40xf32>
    %cst_37 = arith.constant 0.353553385 : f32
    %91 = vector.broadcast %cst_37 : f32 to vector<40x40xf32>
    %92 = arith.mulf %90, %91 : vector<40x40xf32>
    %93 = arith.addf %92, %79 : vector<40x40xf32>
    %cst_38 = arith.constant dense<0xFF800000> : vector<40xf32>
    %94 = vector.multi_reduction <maximumf>, %93, %cst_38 [1] : vector<40x40xf32> to vector<40xf32>
    %95 = vector.shape_cast %94 : vector<40xf32> to vector<40x1xf32>
    %96 = vector.broadcast %95 : vector<40x1xf32> to vector<40x40xf32>
    %97 = arith.subf %93, %96 : vector<40x40xf32>
    %98 = math.exp %97 : vector<40x40xf32>
    %cst_39 = arith.constant dense<0.000000e+00> : vector<40xf32>
    %99 = vector.multi_reduction <add>, %98, %cst_39 [1] : vector<40x40xf32> to vector<40xf32>
    %100 = vector.shape_cast %99 : vector<40xf32> to vector<40x1xf32>
    %101 = tpu.reciprocal %100 {approx = true} : vector<40x1xf32> -> vector<40x1xf32>
    %102 = vector.broadcast %101 : vector<40x1xf32> to vector<40x40xf32>
    %103 = arith.mulf %98, %102 : vector<40x40xf32>
    %104 = arith.mulf %48, %88 : vector<40x32xf32>
    %cst_40 = arith.constant dense<0.000000e+00> : vector<40x32xf32>
    %105 = tpu.matmul %103, %104, %cst_40 {dimension_numbers = #tpu.dot_dimension_numbers<[1], [0], [0], [1], [0, 0, 1, 1], [], []>} : vector<40x40xf32>, vector<40x32xf32>, vector<40x32xf32> -> vector<40x32xf32>
    %106 = arith.addf %81, %105 : vector<40x32xf32>
    %c8_i32_41 = arith.constant 8 : i32
    %107 = vector.broadcast %c8_i32_41 : i32 to vector<40x32xi32>
    %108 = arith.cmpi sge, %80, %107 : vector<40x32xi32>
    %c16_i32 = arith.constant 16 : i32
    %109 = vector.broadcast %c16_i32 : i32 to vector<40x32xi32>
    %110 = arith.cmpi slt, %80, %109 : vector<40x32xi32>
    %111 = arith.andi %108, %110 : vector<40x32xi1>
    %112 = arith.extui %111 : vector<40x32xi1> to vector<40x32xi32>
    %113 = arith.sitofp %112 : vector<40x32xi32> to vector<40x32xf32>
    %114 = arith.mulf %46, %113 : vector<40x32xf32>
    %cst_42 = arith.constant dense<0.000000e+00> : vector<40x40xf32>
    %115 = tpu.matmul %114, %49, %cst_42 {dimension_numbers = #tpu.dot_dimension_numbers<[1], [0], [0], [1], [0, 0, 1, 1], [], []>} : vector<40x32xf32>, vector<32x40xf32>, vector<40x40xf32> -> vector<40x40xf32>
    %cst_43 = arith.constant 0.353553385 : f32
    %116 = vector.broadcast %cst_43 : f32 to vector<40x40xf32>
    %117 = arith.mulf %115, %116 : vector<40x40xf32>
    %118 = arith.addf %117, %79 : vector<40x40xf32>
    %cst_44 = arith.constant dense<0xFF800000> : vector<40xf32>
    %119 = vector.multi_reduction <maximumf>, %118, %cst_44 [1] : vector<40x40xf32> to vector<40xf32>
    %120 = vector.shape_cast %119 : vector<40xf32> to vector<40x1xf32>
    %121 = vector.broadcast %120 : vector<40x1xf32> to vector<40x40xf32>
    %122 = arith.subf %118, %121 : vector<40x40xf32>
    %123 = math.exp %122 : vector<40x40xf32>
    %cst_45 = arith.constant dense<0.000000e+00> : vector<40xf32>
    %124 = vector.multi_reduction <add>, %123, %cst_45 [1] : vector<40x40xf32> to vector<40xf32>
    %125 = vector.shape_cast %124 : vector<40xf32> to vector<40x1xf32>
    %126 = tpu.reciprocal %125 {approx = true} : vector<40x1xf32> -> vector<40x1xf32>
    %127 = vector.broadcast %126 : vector<40x1xf32> to vector<40x40xf32>
    %128 = arith.mulf %123, %127 : vector<40x40xf32>
    %129 = arith.mulf %48, %113 : vector<40x32xf32>
    %cst_46 = arith.constant dense<0.000000e+00> : vector<40x32xf32>
    %130 = tpu.matmul %128, %129, %cst_46 {dimension_numbers = #tpu.dot_dimension_numbers<[1], [0], [0], [1], [0, 0, 1, 1], [], []>} : vector<40x40xf32>, vector<40x32xf32>, vector<40x32xf32> -> vector<40x32xf32>
    %131 = arith.addf %106, %130 : vector<40x32xf32>
    %c16_i32_47 = arith.constant 16 : i32
    %132 = vector.broadcast %c16_i32_47 : i32 to vector<40x32xi32>
    %133 = arith.cmpi sge, %80, %132 : vector<40x32xi32>
    %c24_i32 = arith.constant 24 : i32
    %134 = vector.broadcast %c24_i32 : i32 to vector<40x32xi32>
    %135 = arith.cmpi slt, %80, %134 : vector<40x32xi32>
    %136 = arith.andi %133, %135 : vector<40x32xi1>
    %137 = arith.extui %136 : vector<40x32xi1> to vector<40x32xi32>
    %138 = arith.sitofp %137 : vector<40x32xi32> to vector<40x32xf32>
    %139 = arith.mulf %46, %138 : vector<40x32xf32>
    %cst_48 = arith.constant dense<0.000000e+00> : vector<40x40xf32>
    %140 = tpu.matmul %139, %49, %cst_48 {dimension_numbers = #tpu.dot_dimension_numbers<[1], [0], [0], [1], [0, 0, 1, 1], [], []>} : vector<40x32xf32>, vector<32x40xf32>, vector<40x40xf32> -> vector<40x40xf32>
    %cst_49 = arith.constant 0.353553385 : f32
    %141 = vector.broadcast %cst_49 : f32 to vector<40x40xf32>
    %142 = arith.mulf %140, %141 : vector<40x40xf32>
    %143 = arith.addf %142, %79 : vector<40x40xf32>
    %cst_50 = arith.constant dense<0xFF800000> : vector<40xf32>
    %144 = vector.multi_reduction <maximumf>, %143, %cst_50 [1] : vector<40x40xf32> to vector<40xf32>
    %145 = vector.shape_cast %144 : vector<40xf32> to vector<40x1xf32>
    %146 = vector.broadcast %145 : vector<40x1xf32> to vector<40x40xf32>
    %147 = arith.subf %143, %146 : vector<40x40xf32>
    %148 = math.exp %147 : vector<40x40xf32>
    %cst_51 = arith.constant dense<0.000000e+00> : vector<40xf32>
    %149 = vector.multi_reduction <add>, %148, %cst_51 [1] : vector<40x40xf32> to vector<40xf32>
    %150 = vector.shape_cast %149 : vector<40xf32> to vector<40x1xf32>
    %151 = tpu.reciprocal %150 {approx = true} : vector<40x1xf32> -> vector<40x1xf32>
    %152 = vector.broadcast %151 : vector<40x1xf32> to vector<40x40xf32>
    %153 = arith.mulf %148, %152 : vector<40x40xf32>
    %154 = arith.mulf %48, %138 : vector<40x32xf32>
    %cst_52 = arith.constant dense<0.000000e+00> : vector<40x32xf32>
    %155 = tpu.matmul %153, %154, %cst_52 {dimension_numbers = #tpu.dot_dimension_numbers<[1], [0], [0], [1], [0, 0, 1, 1], [], []>} : vector<40x40xf32>, vector<40x32xf32>, vector<40x32xf32> -> vector<40x32xf32>
    %156 = arith.addf %131, %155 : vector<40x32xf32>
    %c24_i32_53 = arith.constant 24 : i32
    %157 = vector.broadcast %c24_i32_53 : i32 to vector<40x32xi32>
    %158 = arith.cmpi sge, %80, %157 : vector<40x32xi32>
    %c32_i32 = arith.constant 32 : i32
    %159 = vector.broadcast %c32_i32 : i32 to vector<40x32xi32>
    %160 = arith.cmpi slt, %80, %159 : vector<40x32xi32>
    %161 = arith.andi %158, %160 : vector<40x32xi1>
    %162 = arith.extui %161 : vector<40x32xi1> to vector<40x32xi32>
    %163 = arith.sitofp %162 : vector<40x32xi32> to vector<40x32xf32>
    %164 = arith.mulf %46, %163 : vector<40x32xf32>
    %cst_54 = arith.constant dense<0.000000e+00> : vector<40x40xf32>
    %165 = tpu.matmul %164, %49, %cst_54 {dimension_numbers = #tpu.dot_dimension_numbers<[1], [0], [0], [1], [0, 0, 1, 1], [], []>} : vector<40x32xf32>, vector<32x40xf32>, vector<40x40xf32> -> vector<40x40xf32>
    %cst_55 = arith.constant 0.353553385 : f32
    %166 = vector.broadcast %cst_55 : f32 to vector<40x40xf32>
    %167 = arith.mulf %165, %166 : vector<40x40xf32>
    %168 = arith.addf %167, %79 : vector<40x40xf32>
    %cst_56 = arith.constant dense<0xFF800000> : vector<40xf32>
    %169 = vector.multi_reduction <maximumf>, %168, %cst_56 [1] : vector<40x40xf32> to vector<40xf32>
    %170 = vector.shape_cast %169 : vector<40xf32> to vector<40x1xf32>
    %171 = vector.broadcast %170 : vector<40x1xf32> to vector<40x40xf32>
    %172 = arith.subf %168, %171 : vector<40x40xf32>
    %173 = math.exp %172 : vector<40x40xf32>
    %cst_57 = arith.constant dense<0.000000e+00> : vector<40xf32>
    %174 = vector.multi_reduction <add>, %173, %cst_57 [1] : vector<40x40xf32> to vector<40xf32>
    %175 = vector.shape_cast %174 : vector<40xf32> to vector<40x1xf32>
    %176 = tpu.reciprocal %175 {approx = true} : vector<40x1xf32> -> vector<40x1xf32>
    %177 = vector.broadcast %176 : vector<40x1xf32> to vector<40x40xf32>
    %178 = arith.mulf %173, %177 : vector<40x40xf32>
    %179 = arith.mulf %48, %163 : vector<40x32xf32>
    %cst_58 = arith.constant dense<0.000000e+00> : vector<40x32xf32>
    %180 = tpu.matmul %178, %179, %cst_58 {dimension_numbers = #tpu.dot_dimension_numbers<[1], [0], [0], [1], [0, 0, 1, 1], [], []>} : vector<40x40xf32>, vector<40x32xf32>, vector<40x32xf32> -> vector<40x32xf32>
    %181 = arith.addf %156, %180 : vector<40x32xf32>
    %cst_59 = arith.constant dense<0.000000e+00> : vector<40x32xf32>
    %182 = tpu.matmul %181, %2, %cst_59 {dimension_numbers = #tpu.dot_dimension_numbers<[1], [0], [0], [1], [0, 0, 1, 1], [], []>} : vector<40x32xf32>, vector<32x32xf32>, vector<40x32xf32> -> vector<40x32xf32>
    %183 = arith.addf %20, %182 : vector<40x32xf32>
    %184 = vector.broadcast %10 : vector<1x32xf32> to vector<40x32xf32>
    %185 = arith.addf %183, %184 : vector<40x32xf32>
    %cst_60 = arith.constant dense<0.000000e+00> : vector<40xf32>
    %186 = vector.multi_reduction <add>, %185, %cst_60 [1] : vector<40x32xf32> to vector<40xf32>
    %187 = vector.shape_cast %186 : vector<40xf32> to vector<40x1xf32>
    %cst_61 = arith.constant 3.200000e+01 : f32
    %188 = vector.broadcast %cst_61 : f32 to vector<40x1xf32>
    %189 = arith.divf %187, %188 : vector<40x1xf32>
    %190 = vector.broadcast %189 : vector<40x1xf32> to vector<40x32xf32>
    %191 = arith.subf %185, %190 : vector<40x32xf32>
    %192 = arith.mulf %191, %191 : vector<40x32xf32>
    %cst_62 = arith.constant dense<0.000000e+00> : vector<40xf32>
    %193 = vector.multi_reduction <add>, %192, %cst_62 [1] : vector<40x32xf32> to vector<40xf32>
    %194 = vector.shape_cast %193 : vector<40xf32> to vector<40x1xf32>
    %cst_63 = arith.constant 3.200000e+01 : f32
    %195 = vector.broadcast %cst_63 : f32 to vector<40x1xf32>
    %196 = arith.divf %194, %195 : vector<40x1xf32>
    %197 = vector.broadcast %189 : vector<40x1xf32> to vector<40x32xf32>
    %198 = arith.subf %185, %197 : vector<40x32xf32>
    %cst_64 = arith.constant 9.99999974E-6 : f32
    %199 = vector.broadcast %cst_64 : f32 to vector<40x1xf32>
    %200 = arith.addf %196, %199 : vector<40x1xf32>
    %201 = math.rsqrt %200 : vector<40x1xf32>
    %202 = vector.broadcast %201 : vector<40x1xf32> to vector<40x32xf32>
    %203 = arith.mulf %198, %202 : vector<40x32xf32>
    %204 = vector.broadcast %11 : vector<1x32xf32> to vector<40x32xf32>
    %205 = arith.mulf %203, %204 : vector<40x32xf32>
    %206 = vector.broadcast %12 : vector<1x32xf32> to vector<40x32xf32>
    %207 = arith.addf %205, %206 : vector<40x32xf32>
    %cst_65 = arith.constant dense<0.000000e+00> : vector<40x64xf32>
    %208 = tpu.matmul %207, %3, %cst_65 {dimension_numbers = #tpu.dot_dimension_numbers<[1], [0], [0], [1], [0, 0, 1, 1], [], []>} : vector<40x32xf32>, vector<32x64xf32>, vector<40x64xf32> -> vector<40x64xf32>
    %209 = vector.broadcast %13 : vector<1x64xf32> to vector<40x64xf32>
    %210 = arith.addf %208, %209 : vector<40x64xf32>
    %211 = arith.mulf %210, %210 : vector<40x64xf32>
    %212 = arith.mulf %210, %211 : vector<40x64xf32>
    %cst_66 = arith.constant 4.471500e-02 : f32
    %213 = vector.broadcast %cst_66 : f32 to vector<40x64xf32>
    %214 = arith.mulf %213, %212 : vector<40x64xf32>
    %215 = arith.addf %210, %214 : vector<40x64xf32>
    %cst_67 = arith.constant 0.797884583 : f32
    %216 = vector.broadcast %cst_67 : f32 to vector<40x64xf32>
    %217 = arith.mulf %216, %215 : vector<40x64xf32>
    %218 = math.tanh %217 : vector<40x64xf32>
    %cst_68 = arith.constant 1.000000e+00 : f32
    %219 = vector.broadcast %cst_68 : f32 to vector<40x64xf32>
    %220 = arith.addf %219, %218 : vector<40x64xf32>
    %cst_69 = arith.constant 5.000000e-01 : f32
    %221 = vector.broadcast %cst_69 : f32 to vector<40x64xf32>
    %222 = arith.mulf %221, %220 : vector<40x64xf32>
    %223 = arith.mulf %210, %222 : vector<40x64xf32>
    %cst_70 = arith.constant dense<0.000000e+00> : vector<40x32xf32>
    %224 = tpu.matmul %223, %4, %cst_70 {dimension_numbers = #tpu.dot_dimension_numbers<[1], [0], [0], [1], [0, 0, 1, 1], [], []>} : vector<40x64xf32>, vector<64x32xf32>, vector<40x32xf32> -> vector<40x32xf32>
    %225 = arith.addf %185, %224 : vector<40x32xf32>
    %226 = vector.broadcast %14 : vector<1x32xf32> to vector<40x32xf32>
    %227 = arith.addf %225, %226 : vector<40x32xf32>
    %cst_71 = arith.constant dense<0.000000e+00> : vector<40xf32>
    %228 = vector.multi_reduction <add>, %227, %cst_71 [1] : vector<40x32xf32> to vector<40xf32>
    %229 = vector.shape_cast %228 : vector<40xf32> to vector<40x1xf32>
    %cst_72 = arith.constant 3.200000e+01 : f32
    %230 = vector.broadcast %cst_72 : f32 to vector<40x1xf32>
    %231 = arith.divf %229, %230 : vector<40x1xf32>
    %232 = vector.broadcast %231 : vector<40x1xf32> to vector<40x32xf32>
    %233 = arith.subf %227, %232 : vector<40x32xf32>
    %234 = arith.mulf %233, %233 : vector<40x32xf32>
    %cst_73 = arith.constant dense<0.000000e+00> : vector<40xf32>
    %235 = vector.multi_reduction <add>, %234, %cst_73 [1] : vector<40x32xf32> to vector<40xf32>
    %236 = vector.shape_cast %235 : vector<40xf32> to vector<40x1xf32>
    %cst_74 = arith.constant 3.200000e+01 : f32
    %237 = vector.broadcast %cst_74 : f32 to vector<40x1xf32>
    %238 = arith.divf %236, %237 : vector<40x1xf32>
    %239 = vector.broadcast %231 : vector<40x1xf32> to vector<40x32xf32>
    %240 = arith.subf %227, %239 : vector<40x32xf32>
    %cst_75 = arith.constant 9.99999974E-6 : f32
    %241 = vector.broadcast %cst_75 : f32 to vector<40x1xf32>
    %242 = arith.addf %238, %241 : vector<40x1xf32>
    %243 = math.rsqrt %242 : vector<40x1xf32>
    %244 = vector.broadcast %243 : vector<40x1xf32> to vector<40x32xf32>
    %245 = arith.mulf %240, %244 : vector<40x32xf32>
    %246 = vector.broadcast %15 : vector<1x32xf32> to vector<40x32xf32>
    %247 = arith.mulf %245, %246 : vector<40x32xf32>
    %248 = vector.broadcast %16 : vector<1x32xf32> to vector<40x32xf32>
    %249 = arith.addf %247, %248 : vector<40x32xf32>
    %cst_76 = arith.constant dense<0.000000e+00> : vector<40x128xf32>
    %250 = tpu.matmul %249, %5, %cst_76 {dimension_numbers = #tpu.dot_dimension_numbers<[1], [0], [0], [1], [0, 0, 1, 1], [], []>} : vector<40x32xf32>, vector<32x128xf32>, vector<40x128xf32> -> vector<40x128xf32>
    %251 = vector.broadcast %17 : vector<1x128xf32> to vector<40x128xf32>
    %252 = arith.addf %250, %251 : vector<40x128xf32>
    %c0_77 = arith.constant 0 : index
    %c0_78 = arith.constant 0 : index
    %253 = vector.load %arg4[%c0_77, %c0_78] : memref<40x128xf32, #tpu.memory_space<vmem>>, vector<40x128xf32>
    tpu.vector_store %arg4[%c0_77, %c0_78], %252 {strides = array<i32>} : memref<40x128xf32, #tpu.memory_space<vmem>>, vector<40x128xf32>,
    return
  }
  func.func @transform_0(%arg0: i32) -> (i32, i32) {
    %c0_i32 = arith.constant 0 : i32
    %c0_i32_0 = arith.constant 0 : i32
    %c0_i32_1 = arith.constant 0 : i32
    return %c0_i32, %c0_i32_0 : i32, i32
  }
  func.func @transform_1(%arg0: i32) -> (i32, i32) {
    %c0_i32 = arith.constant 0 : i32
    %c0_i32_0 = arith.constant 0 : i32
    %c0_i32_1 = arith.constant 0 : i32
    return %c0_i32, %c0_i32_0 : i32, i32
  }
  func.func @transform_2(%arg0: i32) -> (i32, i32) {
    %c0_i32 = arith.constant 0 : i32
    %c0_i32_0 = arith.constant 0 : i32
    %c0_i32_1 = arith.constant 0 : i32
    return %c0_i32, %c0_i32_0 : i32, i32
  }
  func.func @transform_3(%arg0: i32) -> (i32, i32) {
    %c0_i32 = arith.constant 0 : i32
    %c0_i32_0 = arith.constant 0 : i32
    %c0_i32_1 = arith.constant 0 : i32
    return %c0_i32, %c0_i32_0 : i32, i32
  }
}

</mosaic_0001>

<bundles_post_ra>
// kernel: vit_forward.1
= control target key start
LH: loop header
LB: loop body
LE: loop exit
PB: predicated region body
PF: predicated region fallthrough
CT: control target
= control target key end

     0   :  { %vm67_vm0 = vcmask 523264   ;;  %vm115_vm1 = vcmask 261120   ;;  %v1993_v33 = vmov 32.0   ;;  %s1994_s7 = smov 96   ;;  %s1996_s8 = smov 64   ;;  %s2888_s1 = inlined_call_operand.vmem [shape: f32[256,128], index: 1, kind: input, shape index: {}]   ;;  %s2889_s2 = inlined_call_operand.vmem [shape: f32[56,128], index: 2, kind: input, shape index: {}]   ;;  %s2890_s0 = inlined_call_operand.vmem [shape: f32[40,64], index: 0, kind: input, shape index: {}]   ;;  %s2891_s3 = inlined_call_operand.vmem [shape: f32[40,128], index: 3, kind: output, shape index: {}]  }
   0x1   :  { %v21_v0 = vld [vmem:[%s2888_s1 + $0x38] sm:$0xff]  ;;  %v20_v1 = vld [vmem:[%s2888_s1 + $0x30] sm:$0xff]  ;;  %v19_v2 = vld [vmem:[%s2888_s1 + $0x28] sm:$0xff]  ;;  %1871 = vrcp.f32 %v1993_v33 }
   0x2   :  { %91 = vmatpush.msra.mxu0 %v21_v0  ;;  %1788 = vmatpush.msra.mxu2 %v21_v0  ;;  %v18_v3 = vld [vmem:[%s2888_s1 + $0x20] sm:$0xff]  ;;  %v17_v4 = vld [vmem:[%s2888_s1 + $0x18] sm:$0xff]  ;;  %v16_v5 = vld [vmem:[%s2888_s1 + $0x10] sm:$0xff] }
   0x3   :  { %v15_v6 = vld [vmem:[%s2888_s1 + $0x8] sm:$0xff]  ;;  %v14_v7 = vld [vmem:[%s2888_s1] sm:$0xff]  ;;  %v64_v9 = vld [vmem:[%s2890_s0 + $0x10] sm:$0xff] }
   0x4   :  { %92 = vmatpush.msra.mxu0 %v20_v1  ;;  %1789 = vmatpush.msra.mxu2 %v20_v1  ;;  %v62_v8 = vld [vmem:[%s2890_s0] sm:$0xff]  ;;  %v63_v10 = vld [vmem:[%s2890_s0 + $0x8] sm:$0xff]  ;;  %v65_v11 = vld [vmem:[%s2890_s0 + $0x18] sm:$0xff] }
   0x5   :  { %v66_v12 = vld [vmem:[%s2890_s0 + $0x20] sm:$0xff]  ;;  %v47_v16 = vld [vmem:[%s2889_s2 + $0x18] sm:$0xff]  ;;  %v49_v22 = vld [vmem:[%s2889_s2 + $0x28] sm:$0xff] }
   0x6   :  { %93 = vmatpush.msra.mxu0 %v19_v2  ;;  %1790 = vmatpush.msra.mxu2 %v19_v2  ;;  %v48_v14 = vld [vmem:[%s2889_s2 + $0x20] sm:$0xff]  ;;  %v50_v26 = vld [vmem:[%s2889_s2 + $0x30] sm:$0xff]  ;;  %v25_v1 = vld [vmem:[%s2888_s1 + $0x58] sm:$0xff] }
   0x7   :  { %v46_v29 = vld [vmem:[%s2889_s2 + $0x10] sm:$0xff]  ;;  %v1872_v34 = vpop.eup %1871  ;;  %1796 = vmatpush.msra.mxu3 %v25_v1  ;;  %273 = vmatpush.msra.mxu1 %v25_v1 }
   0x8   :  { %94 = vmatpush.msra.mxu0 %v18_v3  ;;  %1791 = vmatpush.msra.mxu2 %v18_v3  ;;  %v132_v35 = vmul.f32 32.0, %v1872_v34  ;;  %vm136_vm2 = vweird.f32 %v1872_v34  ;;  %v24_v2 = vld [vmem:[%s2888_s1 + $0x50] sm:$0xff]  ;;  %v23_v3 = vld [vmem:[%s2888_s1 + $0x48] sm:$0xff] }
   0x9   :  { %1797 = vmatpush.msra.mxu3 %v24_v2  ;;  %274 = vmatpush.msra.mxu1 %v24_v2 }
   0xa   :  { %95 = vmatpush.msra.mxu0 %v17_v4  ;;  %1792 = vmatpush.msra.mxu2 %v17_v4  ;;  %v133_v36 = vsub.f32 1.0, %v132_v35  ;;  %v22_v4 = vld [vmem:[%s2888_s1 + $0x40] sm:$0xff] }
   0xb   :  { %1798 = vmatpush.msra.mxu3 %v23_v3  ;;  %275 = vmatpush.msra.mxu1 %v23_v3 }
   0xc   :  { %96 = vmatpush.msra.mxu0 %v16_v5  ;;  %1793 = vmatpush.msra.mxu2 %v16_v5  ;;  %v134_v37 = vmul.f32 %v1872_v34, %v133_v36 }
   0xd   :  { %1799 = vmatpush.msra.mxu3 %v22_v4  ;;  %276 = vmatpush.msra.mxu1 %v22_v4 }
   0xe   :  { %97 = vmatpush.msra.mxu0 %v15_v6  ;;  %1794 = vmatpush.msra.mxu2 %v15_v6  ;;  %v135_v38 = vadd.f32 %v1872_v34, %v134_v37 }
  0x10   :  { %98 = vmatpush.msra.mxu0 %v14_v7  ;;  %1795 = vmatpush.msra.mxu2 %v14_v7  ;;  %v2097_v39 = vsel %vm136_vm2, %v1872_v34, %v135_v38  ;;  %v1861_v34 = vld [vmem:[%s2889_s2 + $0x1] ss:$0 sm:$0xff] }
  0x11   :  { %1694 = vmatmul.msk.f32.vlgmr.msra.gmra.mxu0 %vm67_vm0, %v62_v8  ;;  %1696 = vmatmul.msk.f32.vlgmr.msra.gmra.mxu2 %vm67_vm0, %v64_v9 }
  0x19   :  { %1695 = vmatmul.msk.f32.gmra.mxu0 %vm67_vm0, %v63_v10  ;;  %1697 = vmatmul.msk.f32.gmra.mxu2 %vm67_vm0, %v65_v11 }
  0x21   :  { %1698 = vmatmul.msk.f32.gmra.mxu2 %vm67_vm0, %v66_v12 }
  0x8e   :  { %v100_v13 = vpop.f32.mrf.mxu0 }
  0x8f   :  { %v2093_v31 = vadd.f32 %v100_v13, %v46_v29  ;;  %v2156_v29 = vld [vmem:[%s2889_s2] ss:$0 sm:$0xff] }
  0x91   :  { %v116_v32 = vsel %vm115_vm1, %v2093_v31, 0.0 }
  0x94   :  { %v106_v15 = vpop.f32.mrf.mxu2 }
  0x95   :  { %v2068_v17 = vadd.f32 %v106_v15, %v48_v14 }
  0x96   :  { %v103_v18 = vpop.f32.mrf.mxu0 }
  0x97   :  { %v2070_v19 = vadd.f32 %v103_v18, %v47_v16  ;;  %v122_v20 = vsel %vm115_vm1, %v2068_v17, 0.0 }
  0x98   :  { %123 = vadd.xlane.f32.xlu0 %v122_v20 }
  0x99   :  { %v119_v21 = vsel %vm115_vm1, %v2070_v19, 0.0 }
  0x9a   :  { %120 = vadd.xlane.f32.xlu2 %v119_v21 }
  0x9c   :  { %v109_v23 = vpop.f32.mrf.mxu2 }
  0x9d   :  { %v2079_v24 = vadd.f32 %v109_v23, %v49_v22 }
  0x9f   :  { %v125_v25 = vsel %vm115_vm1, %v2079_v24, 0.0 }
  0xa0   :  { %126 = vadd.xlane.f32.xlu0 %v125_v25 }
  0xa4   :  { %v112_v27 = vpop.f32.mrf.mxu2 }
  0xa5   :  { %v2086_v28 = vadd.f32 %v112_v27, %v50_v26 }
  0xa7   :  { %v128_v30 = vsel %vm115_vm1, %v2086_v28, 0.0 }
  0xa8   :  { %129 = vadd.xlane.f32.xlu1 %v128_v30 }
  0xb0   :  { %117 = vadd.xlane.f32.xlu1 %v116_v32 }
 0x10b   :  { %v124_v40 = vpop.xlane.xlu0 %123 }
 0x10c   :  { %v140_v41 = vmul.f32 %v2097_v39, %v124_v40 }
 0x10d   :  { %v121_v45 = vpop.xlane.xlu2 %120 }
 0x10e   :  { %v2101_v42 = vsub.f32 %v2068_v17, %v140_v41  ;;  %v139_v48 = vmul.f32 %v2097_v39, %v121_v45 }
 0x110   :  { %v150_v43 = vmul.f32 %v2101_v42, %v2101_v42  ;;  %v2114_v51 = vsub.f32 %v2070_v19, %v139_v48 }
 0x112   :  { %v159_v44 = vsel %vm115_vm1, %v150_v43, 0.0  ;;  %v149_v56 = vmul.f32 %v2114_v51, %v2114_v51 }
 0x113   :  { %v127_v46 = vpop.xlane.xlu0 %126  ;;  %160 = vadd.xlane.f32.xlu2 %v159_v44 }
 0x114   :  { %v141_v47 = vmul.f32 %v2097_v39, %v127_v46  ;;  %v156_v58 = vsel %vm115_vm1, %v149_v56, 0.0 }
 0x116   :  { %v2109_v49 = vsub.f32 %v2079_v24, %v141_v47 }
 0x118   :  { %v151_v50 = vmul.f32 %v2109_v49, %v2109_v49 }
 0x11a   :  { %v162_v52 = vsel %vm115_vm1, %v151_v50, 0.0 }
 0x11b   :  { %v130_v53 = vpop.xlane.xlu1 %129  ;;  %163 = vadd.xlane.f32.xlu0 %v162_v52 }
 0x11c   :  { %v142_v54 = vmul.f32 %v2097_v39, %v130_v53 }
 0x11e   :  { %v2119_v55 = vsub.f32 %v2086_v28, %v142_v54 }
 0x120   :  { %v152_v57 = vmul.f32 %v2119_v55, %v2119_v55 }
 0x122   :  { %v165_v59 = vsel %vm115_vm1, %v152_v57, 0.0 }
 0x123   :  { %157 = vadd.xlane.f32.xlu0 %v156_v58  ;;  %166 = vadd.xlane.f32.xlu1 %v165_v59  ;;  %v118_v60 = vpop.xlane.xlu1 %117 }
 0x124   :  { %v138_v61 = vmul.f32 %v2097_v39, %v118_v60 }
 0x126   :  { %v2129_v62 = vsub.f32 %v2093_v31, %v138_v61 }
 0x128   :  { %v148_v63 = vmul.f32 %v2129_v62, %v2129_v62 }
 0x12a   :  { %v153_v0 = vsel %vm115_vm1, %v148_v63, 0.0 }
 0x12b   :  { %154 = vadd.xlane.f32.xlu2 %v153_v0 }
 0x186   :  { %v161_v5 = vpop.xlane.xlu2 %160 }
 0x187   :  { %v170_v6 = vmul.f32 %v161_v5, %v2097_v39 }
 0x189   :  { %v175_v7 = vadd.f32 1e-05, %v170_v6 }
 0x18b   :  { %1873 = vrsqrt.f32 %v175_v7  ;;  %vm204_vm4 = vweird.f32 %v175_v7 }
 0x18e   :  { %v164_v8 = vpop.xlane.xlu0 %163 }
 0x18f   :  { %v171_v9 = vmul.f32 %v164_v8, %v2097_v39 }
 0x191   :  { %v1874_v10 = vpop.eup %1873  ;;  %v176_v11 = vadd.f32 1e-05, %v171_v9 }
 0x192   :  { %v199_v12 = vmul.f32 %v1874_v10, %v175_v7  ;;  %vm205_vm3 = vweird.f32 %v1874_v10 }
 0x193   :  { %1875 = vrsqrt.f32 %v176_v11  ;;  %vm206_vm5 = vmor %vm204_vm4, %vm205_vm3  ;;  %vm214_vm7 = vweird.f32 %v176_v11 }
 0x194   :  { %v200_v13 = vmul.f32 %v1874_v10, %v199_v12 }
 0x196   :  { %v201_v14 = vmul.f32 0.5, %v200_v13  ;;  %v158_v15 = vpop.xlane.xlu0 %157  ;;  %v167_v16 = vpop.xlane.xlu1 %166 }
 0x197   :  { %v169_v18 = vmul.f32 %v158_v15, %v2097_v39  ;;  %v172_v20 = vmul.f32 %v167_v16, %v2097_v39  ;;  %v1862_v16 = vld [vmem:[%s2889_s2 + $0x2] ss:$0 sm:$0xff] }
 0x198   :  { %v202_v21 = vsub.f32 1.5, %v201_v14 }
 0x199   :  { %v1876_v22 = vpop.eup %1875  ;;  %v2150_v23 = vadd.f32 1e-05, %v169_v18  ;;  %v177_v25 = vadd.f32 1e-05, %v172_v20 }
 0x19a   :  { %v203_v26 = vmul.f32 %v1874_v10, %v202_v21  ;;  %v209_v27 = vmul.f32 %v1876_v22, %v176_v11  ;;  %vm215_vm6 = vweird.f32 %v1876_v22 }
 0x19b   :  { %1877 = vrsqrt.f32 %v2150_v23  ;;  %vm216_vm8 = vmor %vm214_vm7, %vm215_vm6  ;;  %vm224_vm10 = vweird.f32 %v177_v25  ;;  %vm194_vm2 = vweird.f32 %v2150_v23 }
 0x19c   :  { %v207_v30 = vsel %vm206_vm5, %v1874_v10, %v203_v26  ;;  %v210_v32 = vmul.f32 %v1876_v22, %v209_v27  ;;  %1879 = vrsqrt.f32 %v177_v25 }
 0x19d   :  { %v230_v33 = vmul.f32 %v207_v30, %v2101_v42 }
 0x19e   :  { %v211_v35 = vmul.f32 0.5, %v210_v32  ;;  %v155_v36 = vpop.xlane.xlu2 %154  ;;  %v1995_v32 = vmov 0.0  }
 0x19f   :  { %v168_v37 = vmul.f32 %v155_v36, %v2097_v39  ;;  %v236_v38 = vmul.f32 %v2156_v29, %v230_v33 }
 0x1a0   :  { %v212_v40 = vsub.f32 1.5, %v211_v35 }
 0x1a1   :  { %v1878_v41 = vpop.eup %1877  ;;  %v173_v43 = vadd.f32 1e-05, %v168_v37  ;;  %v242_v44 = vadd.f32 %v1861_v34, %v236_v38 }
 0x1a2   :  { %v1880_v45 = vpop.eup %1879  ;;  %v213_v46 = vmul.f32 %v1876_v22, %v212_v40  ;;  %v189_v42 = vmul.f32 %v1878_v41, %v2150_v23  ;;  %vm195_vm13 = vweird.f32 %v1878_v41 }
 0x1a3   :  { %v219_v47 = vmul.f32 %v1880_v45, %v177_v25  ;;  %1881 = vrsqrt.f32 %v173_v43  ;;  %1701 = vmatmul.msk.f32.vlgmr.msra.gmra.mxu3 %vm115_vm1, %v242_v44  ;;  %vm225_vm9 = vweird.f32 %v1880_v45  ;;  %vm184_vm14 = vweird.f32 %v173_v43  ;;  %vm196_vm3 = vmor %vm194_vm2, %vm195_vm13 }
 0x1a4   :  { %v217_v48 = vsel %vm216_vm8, %v1876_v22, %v213_v46  ;;  %v190_v53 = vmul.f32 %v1878_v41, %v189_v42  ;;  %vm226_vm11 = vmor %vm224_vm10, %vm225_vm9  ;;  %v293_v25 = vlaneseq }
 0x1a5   :  { %v220_v50 = vmul.f32 %v1880_v45, %v219_v47  ;;  %v231_v52 = vmul.f32 %v217_v48, %v2109_v49 }
 0x1a6   :  { %v191_v60 = vmul.f32 0.5, %v190_v53  ;;  %v2192_v26 = vand.u32 127, %v293_v25 }
 0x1a7   :  { %v221_v54 = vmul.f32 0.5, %v220_v50  ;;  %v237_v56 = vmul.f32 %v2156_v29, %v231_v52 }
 0x1a8   :  { %v192_v2 = vsub.f32 1.5, %v191_v60  ;;  %vm513_vm4 = vcmp.ge.s32.totalorder %v2192_v26, 8  ;;  %vm514_vm5 = vcmp.lt.s32.totalorder %v2192_v26, 16  ;;  %vm357_vm7 = vcmp.lt.s32.totalorder %v2192_v26, 8 }
 0x1a9   :  { %v1882_v57 = vpop.eup %1881  ;;  %v222_v58 = vsub.f32 1.5, %v221_v54  ;;  %v243_v59 = vadd.f32 %v1861_v34, %v237_v56  ;;  %vm515_vm6 = vmand %vm513_vm4, %vm514_vm5  ;;  %v2236_v40 = vsel %vm357_vm7, 1.0, %v1995_v32  ;;  %vm778_vm8 = vcmp.ge.s32.totalorder %v2192_v26, 16 }
 0x1aa   :  { %v179_v61 = vmul.f32 %v1882_v57, %v173_v43  ;;  %vm185_vm12 = vweird.f32 %v1882_v57  ;;  %v193_v6 = vmul.f32 %v1878_v41, %v192_v2  ;;  %v1715_v33 = vsel %vm515_vm6, 1.0, %v1995_v32 }
 0x1ab   :  { %v223_v63 = vmul.f32 %v1880_v45, %v222_v58  ;;  %1702 = vmatmul.msk.f32.gmra.mxu3 %vm115_vm1, %v243_v59  ;;  %vm186_vm15 = vmor %vm184_vm14, %vm185_vm12  ;;  %vm779_vm9 = vcmp.lt.s32.totalorder %v2192_v26, 24  ;;  %v294_v60 = vshrl.u32 %v293_v25, 7  ;;  %vm448_vm12 = vcmask 326656  }
 0x1ac   :  { %v180_v0 = vmul.f32 %v1882_v57, %v179_v61  ;;  %v197_v11 = vsel %vm196_vm3, %v1878_v41, %v193_v6  ;;  %vm780_vm10 = vmand %vm778_vm8, %vm779_vm9  ;;  %vm339_vm13 = vcmp.ge.s32.totalorder %v2192_v26, 17  ;;  %vm340_vm14 = vcmp.lt.s32.totalorder %v2192_v26, 34 }
 0x1ad   :  { %v227_v1 = vsel %vm226_vm11, %v1880_v45, %v223_v63  ;;  %v229_v13 = vmul.f32 %v197_v11, %v2114_v51  ;;  %v2276_v53 = vsel %vm780_vm10, 1.0, %v1995_v32  ;;  %vm317_vm11 = vcmp.lt.s32.totalorder %v2192_v26, 17  ;;  %vm2303_vm3 = vmand %vm339_vm13, %vm340_vm14 }
 0x1ae   :  { %v181_v3 = vmul.f32 0.5, %v180_v0  ;;  %v232_v49 = vmul.f32 %v227_v1, %v2119_v55  ;;  %v1997_v63 = vmov -1e+30   ;;  %v296_v2 = vadd.s32 16, %v294_v60 }
 0x1af   :  { %v235_v14 = vmul.f32 %v2156_v29, %v229_v13  ;;  %v2297_v0 = vsel %vm317_vm11, 0.0, %v1997_v63  ;;  %v298_v13 = vadd.s32 32, %v294_v60  ;;  %vm981_vm9 = vcmp.ge.s32.totalorder %v2192_v26, 24 }
 0x1b0   :  { %v182_v4 = vsub.f32 1.5, %v181_v3  ;;  %v238_v5 = vmul.f32 %v2156_v29, %v232_v49  ;;  %vm326_vm2 = vcmp.ge.s32.totalorder %v296_v2, 17  ;;  %vm982_vm10 = vcmp.lt.s32.totalorder %v2192_v26, 32 }
 0x1b1   :  { %v241_v15 = vadd.f32 %v1861_v34, %v235_v14  ;;  %vm344_vm5 = vmand %vm326_vm2, %vm2303_vm3  ;;  %vm333_vm7 = vcmp.lt.s32.totalorder %v298_v13, 34 }
 0x1b2   :  { %v183_v7 = vmul.f32 %v1882_v57, %v182_v4  ;;  %v244_v8 = vadd.f32 %v1861_v34, %v238_v5  ;;  %vm346_vm8 = vmand %vm333_vm7, %vm2303_vm3 }
 0x1b4   :  { %v187_v9 = vsel %vm186_vm15, %v1882_v57, %v183_v7  ;;  %1703 = vmatmul.msk.f32.gmra.mxu3 %vm115_vm1, %v244_v8  ;;  %vm308_vm15 = vcmp.lt.s32.totalorder %v296_v2, 17 }
 0x1b5   :  { %v228_v10 = vmul.f32 %v187_v9, %v2129_v62  ;;  %vm321_vm4 = vmand %vm308_vm15, %vm317_vm11 }
 0x1b6   :  { %vm349_vm6 = vmor %vm321_vm4, %vm344_vm5 }
 0x1b7   :  { %v234_v55 = vmul.f32 %v2156_v29, %v228_v10  ;;  %v2313_v10 = vsel %vm349_vm6, 0.0, %v1997_v63  ;;  %vm983_vm11 = vmand %vm981_vm9, %vm982_vm10 }
 0x1b9   :  { %v240_v12 = vadd.f32 %v1861_v34, %v234_v55 }
 0x1bb   :  { %1699 = vmatmul.msk.f32.vlgmr.msra.gmra.mxu1 %vm115_vm1, %v240_v12 }
 0x1c3   :  { %1700 = vmatmul.msk.f32.gmra.mxu1 %vm115_vm1, %v241_v15  ;;  %v2319_v15 = vsel %vm2303_vm3, 0.0, %v1997_v63 }
 0x226   :  { %v284_v18 = vpop.f32.mrf.mxu3 }
 0x227   :  { %v2182_v20 = vadd.f32 %v1862_v16, %v284_v18 }
 0x229   :  { %375 = vrot.lane.b32.xlu0 %v2182_v20, %s1994_s7  ;;  %v363_v46 = vmul.f32 %v2236_v40, %v2182_v20  ;;  %v520_v42 = vmul.f32 %v1715_v33, %v2182_v20  ;;  %v785_v57 = vmul.f32 %v2276_v53, %v2182_v20 }
 0x22e   :  { %v287_v62 = vpop.f32.mrf.mxu3 }
 0x22f   :  { %v2185_v21 = vadd.f32 %v1862_v16, %v287_v62 }
 0x231   :  { %377 = vrot.lane.b32.xlu2 %v2185_v21, %s1994_s7  ;;  %v364_v47 = vmul.f32 %v2236_v40, %v2185_v21  ;;  %v521_v48 = vmul.f32 %v1715_v33, %v2185_v21  ;;  %v786_v58 = vmul.f32 %v2276_v53, %v2185_v21 }
 0x237   :  { %v290_v51 = vpop.f32.mrf.mxu3 }
 0x238   :  { %v2188_v22 = vadd.f32 %v1862_v16, %v290_v51  ;;  %v278_v23 = vpop.f32.mrf.mxu1 }
 0x239   :  { %v2194_v27 = vadd.f32 %v1862_v16, %v278_v23  ;;  %v2325_v23 = vsel %vm346_vm8, 0.0, %v1997_v63 }
 0x23a   :  { %379 = vrot.lane.b32.xlu1 %v2188_v22, %s1994_s7  ;;  %v365_v50 = vmul.f32 %v2236_v40, %v2188_v22  ;;  %v522_v52 = vmul.f32 %v1715_v33, %v2188_v22  ;;  %v787_v59 = vmul.f32 %v2276_v53, %v2188_v22 }
 0x23b   :  { %v361_v41 = vmul.f32 %v2236_v40, %v2194_v27  ;;  %v518_v43 = vmul.f32 %v1715_v33, %v2194_v27  ;;  %v783_v54 = vmul.f32 %v2276_v53, %v2194_v27 }
 0x240   :  { %v281_v29 = vpop.f32.mrf.mxu1 }
 0x241   :  { %v2196_v30 = vadd.f32 %v1862_v16, %v281_v29 }
 0x242   :  { %371 = vrot.lane.b32.xlu1 %v2194_v27, %s1994_s7 }
 0x243   :  { %373 = vrot.lane.b32.xlu2 %v2196_v30, %s1994_s7  ;;  %v362_v44 = vmul.f32 %v2236_v40, %v2196_v30  ;;  %v519_v45 = vmul.f32 %v1715_v33, %v2196_v30  ;;  %v784_v56 = vmul.f32 %v2276_v53, %v2196_v30 }
 0x24a   :  { %636 = vrot.lane.b32.xlu1 %v1715_v33, %s1996_s8 }
 0x28b   :  { %v2210_v35 = vpop.permute.xlu2 %377 }
 0x29b   :  { %v2216_v36 = vpop.permute.xlu0 %375 }
 0x29d   :  { %v2222_v37 = vpop.permute.xlu2 %373 }
 0x2ac   :  { %v2204_v34 = vpop.permute.xlu1 %379 }
 0x2ad   :  { %1705 = vmatpush.xpose.msk.msrb.mxu2 %vm115_vm1, %v2204_v34  ;;  %1716 = vmatpush.xpose.msk.msrb.mxu3 %vm115_vm1, %v2204_v34 }
 0x2b1   :  { %1706 = vmatpush.xpose.msk.msrb.mxu2 %vm115_vm1, %v2210_v35  ;;  %1717 = vmatpush.xpose.msk.msrb.mxu3 %vm115_vm1, %v2210_v35 }
 0x2b4   :  { %v2229_v38 = vpop.permute.xlu1 %371 }
 0x2b5   :  { %1707 = vmatpush.xpose.msk.msrb.mxu2 %vm115_vm1, %v2216_v36  ;;  %1718 = vmatpush.xpose.msk.msrb.mxu3 %vm115_vm1, %v2216_v36 }
 0x2b9   :  { %1708 = vmatpush.xpose.msk.msrb.mxu2 %vm115_vm1, %v2222_v37  ;;  %1719 = vmatpush.xpose.msk.msrb.mxu3 %vm115_vm1, %v2222_v37 }
 0x2bd   :  { %1709 = vmatpush.xpose.msk.msrb.mxu2 %vm115_vm1, %v2229_v38  ;;  %1720 = vmatpush.xpose.msk.msrb.mxu3 %vm115_vm1, %v2229_v38 }
 0x2c0   :  { %1710 = vmatmul.msk.f32.vlgmr.msrb.gmra.mxu2 %vm115_vm1, %v361_v41  ;;  %1721 = vmatmul.msk.f32.vlgmr.msrb.gmra.mxu3 %vm115_vm1, %v518_v43  ;;  %v637_v41 = vpop.permute.xlu1 %636 }
 0x2c1   :  { %1737 = vmatpush.xpose.msk.msra.mxu2 %vm115_vm1, %v2204_v34  ;;  %v640_v43 = vmul.f32 %v637_v41, %v2196_v30 }
 0x2c5   :  { %1738 = vmatpush.xpose.msk.msra.mxu2 %vm115_vm1, %v2210_v35 }
 0x2c8   :  { %1711 = vmatmul.msk.f32.gmra.mxu2 %vm115_vm1, %v362_v44  ;;  %1722 = vmatmul.msk.f32.gmra.mxu3 %vm115_vm1, %v519_v45  ;;  %v641_v44 = vmul.f32 %v637_v41, %v2182_v20 }
 0x2c9   :  { %1739 = vmatpush.xpose.msk.msra.mxu2 %vm115_vm1, %v2216_v36 }
 0x2ca   :  { %v1810_v45 = vpack.i.bf16 %v640_v43, %v641_v44 }
 0x2cd   :  { %1740 = vmatpush.xpose.msk.msra.mxu2 %vm115_vm1, %v2222_v37 }
 0x2d0   :  { %1712 = vmatmul.msk.f32.gmra.mxu2 %vm115_vm1, %v363_v46  ;;  %1723 = vmatmul.msk.f32.gmra.mxu3 %vm115_vm1, %v520_v42  ;;  %v642_v46 = vmul.f32 %v637_v41, %v2185_v21  ;;  %v643_v42 = vmul.f32 %v637_v41, %v2188_v22 }
 0x2d1   :  { %1741 = vmatpush.xpose.msk.msra.mxu2 %vm115_vm1, %v2229_v38 }
 0x2d8   :  { %1713 = vmatmul.msk.f32.gmra.mxu2 %vm115_vm1, %v364_v47  ;;  %1724 = vmatmul.msk.f32.gmra.mxu3 %vm115_vm1, %v521_v48  ;;  %v1805_v47 = vpack.i.bf16 %v642_v46, %v643_v42 }
 0x2e0   :  { %1714 = vmatmul.msk.f32.gmra.mxu2 %vm115_vm1, %v365_v50  ;;  %1725 = vmatmul.msk.f32.gmra.mxu3 %vm115_vm1, %v522_v52 }
 0x2e8   :  { %1742 = vmatmul.msk.f32.vlgmr.msra.gmra.mxu2 %vm115_vm1, %v783_v54 }
 0x2f0   :  { %1743 = vmatmul.msk.f32.gmra.mxu2 %vm115_vm1, %v784_v56 }
 0x2f8   :  { %1744 = vmatmul.msk.f32.gmra.mxu2 %vm115_vm1, %v785_v57 }
 0x300   :  { %1745 = vmatmul.msk.f32.gmra.mxu2 %vm115_vm1, %v786_v58 }
 0x308   :  { %1746 = vmatmul.msk.f32.gmra.mxu2 %vm115_vm1, %v787_v59 }
 0x343   :  { %v555_v61 = vpop.f32.mrf.mxu3  ;;  %v423_v48 = vpop.f32.mrf.mxu2 }
 0x344   :  { %v570_v1 = vmul.f32 0.35355338, %v555_v61 }
 0x346   :  { %v575_v3 = vadd.f32 %v570_v1, %v2297_v0 }
 0x348   :  { %v580_v49 = vsel %vm448_vm12, %v575_v3, -inf }
 0x349   :  { %581 = vmax.xlane.f32.xlu0 %v580_v49 }
 0x34b   :  { %v558_v5 = vpop.f32.mrf.mxu3  ;;  %v426_v57 = vpop.f32.mrf.mxu2 }
 0x34c   :  { %v571_v6 = vmul.f32 0.35355338, %v558_v5 }
 0x34e   :  { %v576_v7 = vadd.f32 %v571_v6, %v2297_v0 }
 0x350   :  { %v583_v8 = vsel %vm448_vm12, %v576_v7, -inf }
 0x351   :  { %584 = vmax.xlane.f32.xlu2 %v583_v8 }
 0x353   :  { %v561_v9 = vpop.f32.mrf.mxu3  ;;  %v429_v49 = vpop.f32.mrf.mxu2 }
 0x354   :  { %v572_v11 = vmul.f32 0.35355338, %v561_v9  ;;  %v438_v9 = vmul.f32 0.35355338, %v423_v48 }
 0x356   :  { %v577_v55 = vadd.f32 %v572_v11, %v2313_v10  ;;  %v2351_v13 = vadd.f32 %v438_v9, %v2297_v0 }
 0x358   :  { %v586_v12 = vsel %vm448_vm12, %v577_v55, -inf }
 0x359   :  { %587 = vmax.xlane.f32.xlu1 %v586_v12 }
 0x35b   :  { %v564_v14 = vpop.f32.mrf.mxu3  ;;  %v432_v12 = vpop.f32.mrf.mxu2 }
 0x35c   :  { %v573_v16 = vmul.f32 0.35355338, %v564_v14  ;;  %v441_v42 = vmul.f32 0.35355338, %v432_v12 }
 0x35e   :  { %v578_v18 = vadd.f32 %v573_v16, %v2319_v15  ;;  %v439_v16 = vmul.f32 0.35355338, %v426_v57 }
 0x360   :  { %v589_v62 = vsel %vm448_vm12, %v578_v18, -inf  ;;  %v2361_v43 = vadd.f32 %v439_v16, %v2297_v0 }
 0x361   :  { %590 = vmax.xlane.f32.xlu0 %v589_v62  ;;  %v449_v62 = vsel %vm448_vm12, %v2351_v13, -inf }
 0x363   :  { %v567_v51 = vpop.f32.mrf.mxu3 }
 0x364   :  { %v574_v25 = vmul.f32 0.35355338, %v567_v51  ;;  %v435_v51 = vpop.f32.mrf.mxu2 }
 0x366   :  { %v2328_v29 = vadd.f32 %v574_v25, %v2325_v23  ;;  %v639_v25 = vmul.f32 %v637_v41, %v2194_v27  ;;  %v2367_v41 = vadd.f32 %v441_v42, %v2319_v15 }
 0x368   :  { %v592_v33 = vsel %vm448_vm12, %v2328_v29, -inf }
 0x369   :  { %593 = vmax.xlane.f32.xlu2 %v592_v33 }
 0x372   :  { %1811 = vrot.lane.b32.xlu1 %v1810_v45, %s1996_s8 }
 0x381   :  { %1806 = vrot.lane.b32.xlu2 %v1805_v47, %s1996_s8  ;;  %v452_v47 = vsel %vm448_vm12, %v2361_v43, -inf }
 0x3bc   :  { %v582_v50 = vpop.xlane.xlu0 %581 }
 0x3bd   :  { %v595_v52 = vsub.f32 %v575_v3, %v582_v50 }
 0x3bf   :  { %v600_v54 = vmul.f32 1.442695, %v595_v52  ;;  %v820_v52 = vpop.f32.mrf.mxu2 }
 0x3c1   :  { %1883 = vpow2.f32 %v600_v54  ;;  %v835_v54 = vmul.f32 0.35355338, %v820_v52 }
 0x3c3   :  { %v2372_v57 = vadd.f32 %v835_v54, %v2297_v0 }
 0x3c4   :  { %v585_v56 = vpop.xlane.xlu2 %584 }
 0x3c5   :  { %v596_v58 = vsub.f32 %v576_v7, %v585_v56  ;;  %v458_v56 = vsel %vm448_vm12, %v2367_v41, -inf }
 0x3c7   :  { %v2338_v59 = vpop.eup %1883  ;;  %v602_v60 = vmul.f32 1.442695, %v596_v58  ;;  %v1815_v58 = vpack.i.bf16 %v2276_v53, %v2236_v40  ;;  %v442_v53 = vmul.f32 0.35355338, %v435_v51 }
 0x3c8   :  { %v610_v61 = vsel %vm448_vm12, %v2338_v59, 0.0 }
 0x3c9   :  { %1885 = vpow2.f32 %v602_v60  ;;  %611 = vadd.xlane.f32.xlu0 %v610_v61  ;;  %v845_v60 = vsel %vm448_vm12, %v2372_v57, -inf  ;;  %v2390_v9 = vadd.f32 %v442_v53, %v2325_v23 }
 0x3cb   :  { %v461_v12 = vsel %vm448_vm12, %v2390_v9, -inf }
 0x3cc   :  { %v588_v63 = vpop.xlane.xlu1 %587 }
 0x3cd   :  { %v597_v1 = vsub.f32 %v577_v55, %v588_v63 }
 0x3cf   :  { %v2342_v2 = vpop.eup %1885  ;;  %v604_v4 = vmul.f32 1.442695, %v597_v1 }
 0x3d0   :  { %v613_v3 = vsel %vm448_vm12, %v2342_v2, 0.0 }
 0x3d1   :  { %1887 = vpow2.f32 %v604_v4  ;;  %614 = vadd.xlane.f32.xlu0 %v613_v3  ;;  %v823_v4 = vpop.f32.mrf.mxu2  ;;  %v440_v3 = vmul.f32 0.35355338, %v429_v49 }
 0x3d2   :  { %v836_v49 = vmul.f32 0.35355338, %v823_v4 }
 0x3d3   :  { %v2385_v40 = vadd.f32 %v440_v3, %v2313_v10 }
 0x3d4   :  { %v591_v5 = vpop.xlane.xlu0 %590  ;;  %v2400_v16 = vadd.f32 %v836_v49, %v2297_v0 }
 0x3d5   :  { %v598_v6 = vsub.f32 %v578_v18, %v591_v5 }
 0x3d7   :  { %v2346_v7 = vpop.eup %1887  ;;  %v606_v8 = vmul.f32 1.442695, %v598_v6 }
 0x3d8   :  { %v616_v11 = vsel %vm448_vm12, %v2346_v7, 0.0 }
 0x3d9   :  { %1889 = vpow2.f32 %v606_v8  ;;  %617 = vadd.xlane.f32.xlu2 %v616_v11  ;;  %v826_v6 = vpop.f32.mrf.mxu2  ;;  %v455_v8 = vsel %vm448_vm12, %v2385_v40, -inf }
 0x3dc   :  { %v594_v55 = vpop.xlane.xlu2 %593 }
 0x3dd   :  { %v599_v61 = vsub.f32 %v2328_v29, %v594_v55  ;;  %v837_v29 = vmul.f32 0.35355338, %v826_v6 }
 0x3df   :  { %v2353_v14 = vpop.eup %1889  ;;  %v608_v63 = vmul.f32 1.442695, %v599_v61  ;;  %v2393_v11 = vadd.f32 %v837_v29, %v2313_v10 }
 0x3e0   :  { %v619_v18 = vsel %vm448_vm12, %v2353_v14, 0.0 }
 0x3e1   :  { %620 = vadd.xlane.f32.xlu1 %v619_v18  ;;  %450 = vmax.xlane.f32.xlu2 %v449_v62  ;;  %1891 = vpow2.f32 %v608_v63  ;;  %v851_v55 = vsel %vm448_vm12, %v2393_v11, -inf  ;;  %v848_v18 = vsel %vm448_vm12, %v2400_v16, -inf }
 0x3e4   :  { %v1807_v33 = vpop.permute.xlu2 %1806  ;;  %v1812_v45 = vpop.permute.xlu1 %1811 }
 0x3e5   :  { %649 = vrot.lane.b32.xlu0 %v639_v25, %s1996_s8  ;;  %v1808_v44 = vunpack.i.l.bf16 %v1807_v33  ;;  %v1809_v46 = vunpack.i.h.bf16 %v1807_v33  ;;  %v1813_v48 = vunpack.i.l.bf16 %v1812_v45  ;;  %v1814_v50 = vunpack.i.h.bf16 %v1812_v45 }
 0x3e7   :  { %690 = vmatpush.msrb.mxu1 %v1808_v44  ;;  %v2380_v1 = vpop.eup %1891 }
 0x3e8   :  { %v622_v5 = vsel %vm448_vm12, %v2380_v1, 0.0 }
 0x3e9   :  { %453 = vmax.xlane.f32.xlu1 %v452_v47  ;;  %691 = vmatpush.msrb.mxu1 %v1809_v46 }
 0x3eb   :  { %692 = vmatpush.msrb.mxu1 %v1813_v48 }
 0x3ed   :  { %693 = vmatpush.msrb.mxu1 %v1814_v50 }
 0x3f1   :  { %459 = vmax.xlane.f32.xlu1 %v458_v56 }
 0x3f9   :  { %1816 = vrot.lane.b32.xlu2 %v1815_v58, %s1996_s8  ;;  %846 = vmax.xlane.f32.xlu1 %v845_v60  ;;  %v2422_v58 = vsel %vm983_vm11, 1.0, %v1995_v32 }
 0x40f   :  { %623 = vadd.xlane.f32.xlu0 %v622_v5 }
 0x417   :  { %456 = vmax.xlane.f32.xlu0 %v455_v8  ;;  %v829_v8 = vpop.f32.mrf.mxu2 }
 0x41f   :  { %462 = vmax.xlane.f32.xlu0 %v461_v12  ;;  %v838_v12 = vmul.f32 0.35355338, %v829_v8 }
 0x422   :  { %852 = vmax.xlane.f32.xlu2 %v851_v55 }
 0x427   :  { %849 = vmax.xlane.f32.xlu0 %v848_v18 }
 0x43c   :  { %v612_v62 = vpop.xlane.xlu0 %611 }
 0x43d   :  { %1893 = vrcp.f32 %v612_v62  ;;  %v832_v62 = vpop.f32.mrf.mxu2 }
 0x443   :  { %v1894_v33 = vpop.eup %1893 }
 0x444   :  { %v615_v25 = vpop.xlane.xlu0 %614  ;;  %v630_v47 = vmul.f32 %v1894_v33, %v2338_v59 }
 0x445   :  { %1895 = vrcp.f32 %v615_v25 }
 0x44b   :  { %v1896_v48 = vpop.eup %1895 }
 0x44c   :  { %v618_v51 = vpop.xlane.xlu2 %617 }
 0x454   :  { %v451_v44 = vpop.xlane.xlu2 %450 }
 0x455   :  { %v464_v45 = vsub.f32 %v2351_v13, %v451_v44  ;;  %v631_v13 = vmul.f32 %v1896_v48, %v2342_v2  ;;  %v621_v2 = vpop.xlane.xlu1 %620 }
 0x457   :  { %v469_v46 = vmul.f32 1.442695, %v464_v45  ;;  %v650_v42 = vpop.permute.xlu0 %649  ;;  %v839_v45 = vmul.f32 0.35355338, %v832_v62 }
 0x458   :  { %694 = vmatpush.msrb.mxu1 %v650_v42 }
 0x459   :  { %1897 = vpow2.f32 %v469_v46  ;;  %1726 = vmatmul.msk.f32.vlgmr.msrb.gmra.mxu1 %vm448_vm12, %v630_v47  ;;  %v2462_v48 = vadd.f32 %v839_v45, %v2325_v23 }
 0x45a   :  { %1753 = vmatpush.xpose.msk.msra.mxu1 %vm115_vm1, %v2204_v34  ;;  %1899 = vrcp.f32 %v618_v51 }
 0x45b   :  { %1901 = vrcp.f32 %v621_v2 }
 0x45c   :  { %v1817_v50 = vpop.permute.xlu2 %1816 }
 0x45d   :  { %v1818_v52 = vunpack.i.l.bf16 %v1817_v50  ;;  %v454_v5 = vpop.xlane.xlu1 %453  ;;  %v2440_v53 = vunpack.i.h.bf16 %v1817_v50 }
 0x45e   :  { %1754 = vmatpush.xpose.msk.msra.mxu1 %vm115_vm1, %v2210_v35 }
 0x45f   :  { %v2413_v59 = vpop.eup %1897  ;;  %v508_v54 = vmul.f32 %v1818_v52, %v2194_v27  ;;  %v509_v34 = vmul.f32 %v1818_v52, %v2196_v30  ;;  %v512_v56 = vmul.f32 %v1818_v52, %v2188_v22  ;;  %v510_v4 = vmul.f32 %v1818_v52, %v2182_v20 }
 0x460   :  { %v479_v26 = vsel %vm448_vm12, %v2413_v59, 0.0  ;;  %v1900_v61 = vpop.eup %1899  ;;  %v511_v3 = vmul.f32 %v1818_v52, %v2185_v21  ;;  %v857_v52 = vsel %vm448_vm12, %v2462_v48, -inf }
 0x461   :  { %1727 = vmatmul.msk.f32.gmra.mxu1 %vm448_vm12, %v631_v13  ;;  %480 = vadd.xlane.f32.xlu1 %v479_v26  ;;  %v1830_v35 = vpack.i.bf16 %v508_v54, %v509_v34  ;;  %v1820_v60 = vpack.i.bf16 %v512_v56, %v2422_v58  ;;  %v632_v32 = vmul.f32 %v1900_v61, %v2346_v7  ;;  %v1902_v63 = vpop.eup %1901 }
 0x462   :  { %1755 = vmatpush.xpose.msk.msra.mxu1 %vm115_vm1, %v2216_v36  ;;  %v633_v36 = vmul.f32 %v1902_v63, %v2353_v14  ;;  %v465_v7 = vsub.f32 %v2361_v43, %v454_v5  ;;  %v908_v14 = vmul.f32 %v2440_v53, %v2188_v22  ;;  %v2452_v43 = vadd.f32 %v838_v12, %v2319_v15 }
 0x463   :  { %1831 = vrot.lane.b32.xlu2 %v1830_v35, %s1996_s8  ;;  %1821 = vrot.lane.b32.xlu0 %v1820_v60, %s1996_s8  ;;  %v987_v26 = vmul.f32 %v2422_v58, %v2196_v30  ;;  %v990_v5 = vmul.f32 %v2422_v58, %v2188_v22 }
 0x464   :  { %v471_v6 = vmul.f32 1.442695, %v465_v7  ;;  %v854_v46 = vsel %vm448_vm12, %v2452_v43, -inf  ;;  %v906_v7 = vmul.f32 %v2440_v53, %v2182_v20 }
 0x465   :  { %v460_v47 = vpop.xlane.xlu1 %459 }
 0x466   :  { %1756 = vmatpush.xpose.msk.msra.mxu1 %vm115_vm1, %v2222_v37  ;;  %v1825_v37 = vpack.i.bf16 %v510_v4, %v511_v3  ;;  %1903 = vpow2.f32 %v471_v6  ;;  %v989_v4 = vmul.f32 %v2422_v58, %v2185_v21 }
 0x469   :  { %1728 = vmatmul.msk.f32.gmra.mxu1 %vm448_vm12, %v632_v32 }
 0x46a   :  { %1757 = vmatpush.xpose.msk.msra.mxu1 %vm115_vm1, %v2229_v38  ;;  %v907_v38 = vmul.f32 %v2440_v53, %v2185_v21 }
 0x46c   :  { %v1835_v29 = vpack.i.bf16 %v907_v38, %v908_v14  ;;  %v2449_v55 = vpop.eup %1903 }
 0x46d   :  { %v482_v44 = vsel %vm448_vm12, %v2449_v55, 0.0  ;;  %v847_v14 = vpop.xlane.xlu1 %846 }
 0x46e   :  { %v860_v6 = vsub.f32 %v2372_v57, %v847_v14 }
 0x470   :  { %v865_v8 = vmul.f32 1.442695, %v860_v6 }
 0x471   :  { %1729 = vmatmul.msk.f32.gmra.mxu1 %vm448_vm12, %v633_v36 }
 0x47a   :  { %1826 = vrot.lane.b32.xlu1 %v1825_v37, %s1996_s8  ;;  %v905_v37 = vmul.f32 %v2440_v53, %v2196_v30 }
 0x47c   :  { %v1840_v38 = vpack.i.bf16 %v905_v37, %v906_v7 }
 0x482   :  { %v624_v49 = vpop.xlane.xlu0 %623  ;;  %1836 = vrot.lane.b32.xlu1 %v1835_v29, %s1996_s8 }
 0x483   :  { %1905 = vrcp.f32 %v624_v49 }
 0x489   :  { %v1906_v18 = vpop.eup %1905 }
 0x48a   :  { %v457_v51 = vpop.xlane.xlu0 %456  ;;  %v634_v25 = vmul.f32 %v1906_v18, %v2380_v1  ;;  %v986_v1 = vmul.f32 %v2422_v58, %v2194_v27 }
 0x48b   :  { %v466_v33 = vsub.f32 %v2385_v40, %v457_v51  ;;  %v467_v40 = vsub.f32 %v2367_v41, %v460_v47 }
 0x48c   :  { %1730 = vmatmul.msk.f32.gmra.mxu1 %vm448_vm12, %v634_v25  ;;  %483 = vadd.xlane.f32.xlu2 %v482_v44 }
 0x48d   :  { %855 = vmax.xlane.f32.xlu0 %v854_v46  ;;  %v473_v42 = vmul.f32 1.442695, %v466_v33  ;;  %v475_v13 = vmul.f32 1.442695, %v467_v40 }
 0x48f   :  { %1907 = vpow2.f32 %v473_v42 }
 0x490   :  { %1909 = vpow2.f32 %v475_v13 }
 0x492   :  { %v463_v50 = vpop.xlane.xlu0 %462 }
 0x493   :  { %v468_v34 = vsub.f32 %v2390_v9, %v463_v50  ;;  %v988_v9 = vmul.f32 %v2422_v58, %v2182_v20  ;;  %v2510_v58 = vmul.f32 %v2440_v53, %v2194_v27 }
 0x494   :  { %1758 = vmatmul.msk.f32.vlgmr.msra.gmra.mxu1 %vm115_vm1, %v986_v1 }
 0x495   :  { %858 = vmax.xlane.f32.xlu0 %v857_v52  ;;  %v2470_v54 = vpop.eup %1907  ;;  %v477_v2 = vmul.f32 1.442695, %v468_v34  ;;  %v2524_v44 = vpop.xlane.xlu2 %852 }
 0x496   :  { %v485_v41 = vsel %vm448_vm12, %v2470_v54, 0.0  ;;  %v2479_v61 = vpop.eup %1909 }
 0x49a   :  { %v850_v56 = vpop.xlane.xlu0 %849 }
 0x49b   :  { %v861_v35 = vsub.f32 %v2400_v16, %v850_v56  ;;  %v488_v16 = vsel %vm448_vm12, %v2479_v61, 0.0 }
 0x49c   :  { %1759 = vmatmul.msk.f32.gmra.mxu1 %vm115_vm1, %v987_v26 }
 0x49d   :  { %v867_v60 = vmul.f32 1.442695, %v861_v35  ;;  %486 = vadd.xlane.f32.xlu0 %v485_v41 }
 0x49f   :  { %1911 = vpow2.f32 %v867_v60 }
 0x4a0   :  { %1913 = vpow2.f32 %v477_v2 }
 0x4a1   :  { %1915 = vpow2.f32 %v865_v8 }
 0x4a4   :  { %1760 = vmatmul.msk.f32.gmra.mxu1 %vm115_vm1, %v988_v9 }
 0x4a5   :  { %v2486_v32 = vpop.eup %1911  ;;  %489 = vadd.xlane.f32.xlu0 %v488_v16 }
 0x4a6   :  { %v878_v63 = vsel %vm448_vm12, %v2486_v32, 0.0  ;;  %v2490_v36 = vpop.eup %1913 }
 0x4a7   :  { %879 = vadd.xlane.f32.xlu2 %v878_v63  ;;  %v491_v3 = vsel %vm448_vm12, %v2490_v36, 0.0  ;;  %v2518_v51 = vpop.eup %1915 }
 0x4a8   :  { %v875_v57 = vsel %vm448_vm12, %v2518_v51, 0.0 }
 0x4ac   :  { %1761 = vmatmul.msk.f32.gmra.mxu1 %vm115_vm1, %v989_v4  ;;  %492 = vadd.xlane.f32.xlu1 %v491_v3 }
 0x4b4   :  { %1762 = vmatmul.msk.f32.gmra.mxu1 %vm115_vm1, %v990_v5 }
 0x4b9   :  { %1841 = vrot.lane.b32.xlu0 %v1840_v38, %s1996_s8 }
 0x4bd   :  { %v1832_v46 = vpop.permute.xlu2 %1831 }
 0x4be   :  { %v1833_v50 = vunpack.i.l.bf16 %v1832_v46  ;;  %v1834_v1 = vunpack.i.h.bf16 %v1832_v46 }
 0x4d4   :  { %v481_v33 = vpop.xlane.xlu1 %480 }
 0x4d5   :  { %v1822_v29 = vpop.permute.xlu0 %1821  ;;  %1917 = vrcp.f32 %v481_v33 }
 0x4d6   :  { %v2506_v49 = vunpack.i.l.bf16 %v1822_v29  ;;  %v1824_v12 = vunpack.i.h.bf16 %v1822_v29  ;;  %v2522_v25 = vpop.f32.mrf.mxu1 }
 0x4d8   :  { %757 = vmatpush.msrb.mxu0 %v1824_v12  ;;  %v2514_v18 = vmul.f32 %v2506_v49, %v2188_v22 }
 0x4da   :  { %v1845_v62 = vpack.i.bf16 %v2514_v18, %v2510_v58 }
 0x4db   :  { %v1918_v47 = vpop.eup %1917 }
 0x4dc   :  { %v499_v52 = vmul.f32 %v1918_v47, %v2413_v59 }
 0x4de   :  { %v2526_v45 = vpop.f32.mrf.mxu1 }
 0x4e3   :  { %876 = vadd.xlane.f32.xlu0 %v875_v57 }
 0x4e6   :  { %v2530_v34 = vpop.f32.mrf.mxu1 }
 0x4ec   :  { %v1827_v53 = vpop.permute.xlu1 %1826 }
 0x4ed   :  { %v1828_v22 = vunpack.i.l.bf16 %v1827_v53  ;;  %v1829_v42 = vunpack.i.h.bf16 %v1827_v53 }
 0x4ee   :  { %v2534_v41 = vpop.f32.mrf.mxu1 }
 0x4ef   :  { %758 = vmatpush.msrb.mxu0 %v1828_v22 }
 0x4f1   :  { %759 = vmatpush.msrb.mxu0 %v1829_v42 }
 0x4f3   :  { %760 = vmatpush.msrb.mxu0 %v1833_v50 }
 0x4f4   :  { %v1837_v40 = vpop.permute.xlu1 %1836 }
 0x4f5   :  { %v1838_v13 = vunpack.i.l.bf16 %v1837_v40  ;;  %761 = vmatpush.msrb.mxu0 %v1834_v1  ;;  %v1839_v56 = vunpack.i.h.bf16 %v1837_v40  ;;  %v1109_v40 = vmul.f32 %v2506_v49, %v2182_v20  ;;  %v1107_v20 = vmul.f32 %v2506_v49, %v2194_v27 }
 0x4f6   :  { %1731 = vmatmul.msk.f32.vlgmr.msrb.gmra.mxu0 %vm448_vm12, %v499_v52 }
 0x4f7   :  { %955 = vmatpush.msra.mxu3 %v1838_v13 }
 0x4f9   :  { %956 = vmatpush.msra.mxu3 %v1839_v56 }
 0x4ff   :  { %v484_v26 = vpop.xlane.xlu2 %483 }
 0x500   :  { %1919 = vrcp.f32 %v484_v26  ;;  %v2532_v35 = vpop.xlane.xlu0 %855 }
 0x506   :  { %v1920_v60 = vpop.eup %1919 }
 0x507   :  { %v500_v2 = vmul.f32 %v1920_v60, %v2449_v55 }
 0x508   :  { %v2537_v9 = vpop.xlane.xlu0 %858 }
 0x509   :  { %v2539_v59 = vpop.f32.mrf.mxu1  ;;  %1732 = vmatmul.msk.f32.gmra.mxu0 %vm448_vm12, %v500_v2  ;;  %v862_v2 = vsub.f32 %v2393_v11, %v2524_v44  ;;  %v864_v11 = vsub.f32 %v2462_v48, %v2537_v9 }
 0x510   :  { %v487_v16 = vpop.xlane.xlu0 %486 }
 0x511   :  { %1921 = vrcp.f32 %v487_v16  ;;  %v1023_v63 = vpop.f32.mrf.mxu1 }
 0x512   :  { %v1038_v4 = vmul.f32 0.35355338, %v1023_v63  ;;  %v869_v63 = vmul.f32 1.442695, %v862_v2 }
 0x514   :  { %v1043_v3 = vadd.f32 %v1038_v4, %v2297_v0 }
 0x516   :  { %v1048_v5 = vsel %vm448_vm12, %v1043_v3, -inf }
 0x517   :  { %v1922_v37 = vpop.eup %1921  ;;  %1049 = vmax.xlane.f32.xlu1 %v1048_v5 }
 0x518   :  { %v490_v7 = vpop.xlane.xlu0 %489  ;;  %v501_v38 = vmul.f32 %v1922_v37, %v2470_v54 }
 0x519   :  { %1923 = vrcp.f32 %v490_v7  ;;  %v1026_v55 = vpop.f32.mrf.mxu1 }
 0x51a   :  { %v1039_v14 = vmul.f32 0.35355338, %v1026_v55  ;;  %1733 = vmatmul.msk.f32.gmra.mxu0 %vm448_vm12, %v501_v38 }
 0x51c   :  { %v1044_v6 = vadd.f32 %v1039_v14, %v2297_v0  ;;  %v873_v14 = vmul.f32 1.442695, %v864_v11 }
 0x51e   :  { %v1051_v8 = vsel %vm448_vm12, %v1044_v6, -inf }
 0x51f   :  { %v1924_v29 = vpop.eup %1923  ;;  %1052 = vmax.xlane.f32.xlu0 %v1051_v8  ;;  %v493_v12 = vpop.xlane.xlu1 %492 }
 0x520   :  { %1925 = vrcp.f32 %v493_v12  ;;  %v502_v57 = vmul.f32 %v1924_v29, %v2479_v61 }
 0x521   :  { %v1029_v33 = vpop.f32.mrf.mxu1  ;;  %1927 = vpow2.f32 %v869_v63 }
 0x522   :  { %v1040_v53 = vmul.f32 0.35355338, %v1029_v33  ;;  %1734 = vmatmul.msk.f32.gmra.mxu0 %vm448_vm12, %v502_v57 }
 0x524   :  { %v1045_v54 = vadd.f32 %v1040_v53, %v2313_v10  ;;  %v1110_v10 = vmul.f32 %v2506_v49, %v2185_v21  ;;  %v1108_v21 = vmul.f32 %v2506_v49, %v2196_v30 }
 0x526   :  { %v1926_v22 = vpop.eup %1925  ;;  %v1054_v46 = vsel %vm448_vm12, %v1045_v54, -inf  ;;  %v1850_v56 = vpack.i.bf16 %v1109_v40, %v1110_v10  ;;  %v1855_v16 = vpack.i.bf16 %v1107_v20, %v1108_v21  ;;  %v863_v40 = vsub.f32 %v2452_v43, %v2532_v35 }
 0x527   :  { %1055 = vmax.xlane.f32.xlu1 %v1054_v46  ;;  %v503_v0 = vmul.f32 %v1926_v22, %v2490_v36  ;;  %v2570_v4 = vpop.eup %1927 }
 0x528   :  { %v871_v10 = vmul.f32 1.442695, %v863_v40 }
 0x529   :  { %v1032_v42 = vpop.f32.mrf.mxu1 }
 0x52a   :  { %v1041_v47 = vmul.f32 0.35355338, %v1032_v42  ;;  %1735 = vmatmul.msk.f32.gmra.mxu0 %vm448_vm12, %v503_v0 }
 0x52b   :  { %v1842_v50 = vpop.permute.xlu0 %1841 }
 0x52c   :  { %v1843_v1 = vunpack.i.l.bf16 %v1842_v50  ;;  %v1046_v61 = vadd.f32 %v1041_v47, %v2319_v15  ;;  %v1844_v52 = vunpack.i.h.bf16 %v1842_v50 }
 0x52e   :  { %957 = vmatpush.msra.mxu3 %v1843_v1  ;;  %v1057_v13 = vsel %vm448_vm12, %v1046_v61, -inf }
 0x52f   :  { %1058 = vmax.xlane.f32.xlu1 %v1057_v13 }
 0x530   :  { %958 = vmatpush.msra.mxu3 %v1844_v52 }
 0x531   :  { %v1035_v36 = vpop.f32.mrf.mxu1 }
 0x532   :  { %v1042_v26 = vmul.f32 0.35355338, %v1035_v36  ;;  %v880_v36 = vpop.xlane.xlu2 %879 }
 0x533   :  { %1851 = vrot.lane.b32.xlu0 %v1850_v56, %s1996_s8 }
 0x534   :  { %v1047_v60 = vadd.f32 %v1042_v26, %v2325_v23  ;;  %v881_v23 = vsel %vm448_vm12, %v2570_v4, 0.0 }
 0x536   :  { %v1060_v15 = vsel %vm448_vm12, %v1047_v60, -inf }
 0x537   :  { %1061 = vmax.xlane.f32.xlu1 %v1060_v15 }
 0x550   :  { %1856 = vrot.lane.b32.xlu1 %v1855_v16, %s1996_s8 }
 0x556   :  { %v877_v5 = vpop.xlane.xlu0 %876 }
 0x55d   :  { %882 = vadd.xlane.f32.xlu0 %v881_v23 }
 0x58a   :  { %v1050_v37 = vpop.xlane.xlu1 %1049 }
 0x58b   :  { %v1063_v27 = vsub.f32 %v1043_v3, %v1050_v37 }
 0x58d   :  { %v1068_v7 = vmul.f32 1.442695, %v1063_v27 }
 0x58f   :  { %1929 = vpow2.f32 %v1068_v7 }
 0x592   :  { %v1053_v30 = vpop.xlane.xlu0 %1052 }
 0x593   :  { %v1064_v49 = vsub.f32 %v1044_v6, %v1053_v30 }
 0x595   :  { %v2574_v38 = vpop.eup %1929  ;;  %v1070_v44 = vmul.f32 1.442695, %v1064_v49 }
 0x596   :  { %v1078_v55 = vsel %vm448_vm12, %v2574_v38, 0.0 }
 0x597   :  { %1931 = vpow2.f32 %v1070_v44  ;;  %1079 = vadd.xlane.f32.xlu2 %v1078_v55 }
 0x598   :  { %1933 = vpow2.f32 %v873_v14 }
 0x59a   :  { %v1056_v8 = vpop.xlane.xlu1 %1055 }
 0x59b   :  { %v1065_v29 = vsub.f32 %v1045_v54, %v1056_v8 }
 0x59d   :  { %v2580_v12 = vpop.eup %1931  ;;  %v1072_v3 = vmul.f32 1.442695, %v1065_v29 }
 0x59e   :  { %v1081_v6 = vsel %vm448_vm12, %v2580_v12, 0.0  ;;  %v2584_v48 = vpop.eup %1933 }
 0x59f   :  { %1935 = vpow2.f32 %v1072_v3  ;;  %1082 = vadd.xlane.f32.xlu1 %v1081_v6  ;;  %v887_v54 = vsel %vm448_vm12, %v2584_v48, 0.0  ;;  %v29_v3 = vld [vmem:[%s2888_s1 + $0x78] sm:$0xff] }
 0x5a0   :  { %1211 = vmatpush.msrb.mxu2 %v29_v3 }
 0x5a2   :  { %v1059_v57 = vpop.xlane.xlu1 %1058 }
 0x5a3   :  { %v1066_v9 = vsub.f32 %v1046_v61, %v1059_v57 }
 0x5a5   :  { %v2586_v33 = vpop.eup %1935  ;;  %v1074_v53 = vmul.f32 1.442695, %v1066_v9  ;;  %v1852_v58 = vpop.permute.xlu0 %1851 }
 0x5a6   :  { %v1084_v22 = vsel %vm448_vm12, %v2586_v33, 0.0  ;;  %v1853_v35 = vunpack.i.l.bf16 %v1852_v58  ;;  %v1854_v21 = vunpack.i.h.bf16 %v1852_v58 }
 0x5a7   :  { %1937 = vpow2.f32 %v1074_v53  ;;  %1085 = vadd.xlane.f32.xlu0 %v1084_v22  ;;  %888 = vadd.xlane.f32.xlu1 %v887_v54  ;;  %v763_v22 = vpop.f32.mrf.mxu0 }
 0x5aa   :  { %v1062_v46 = vpop.xlane.xlu1 %1061 }
 0x5ab   :  { %v1067_v0 = vsub.f32 %v1047_v60, %v1062_v46  ;;  %v28_v46 = vld [vmem:[%s2888_s1 + $0x70] sm:$0xff] }
 0x5ac   :  { %1212 = vmatpush.msrb.mxu2 %v28_v46 }
 0x5ad   :  { %v2592_v42 = vpop.eup %1937  ;;  %v1076_v47 = vmul.f32 1.442695, %v1067_v0  ;;  %v27_v0 = vld [vmem:[%s2888_s1 + $0x68] sm:$0xff] }
 0x5ae   :  { %v1087_v50 = vsel %vm448_vm12, %v2592_v42, 0.0  ;;  %1213 = vmatpush.msrb.mxu2 %v27_v0 }
 0x5af   :  { %1939 = vpow2.f32 %v1076_v47  ;;  %1846 = vrot.lane.b32.xlu2 %v1845_v62, %s1996_s8  ;;  %1088 = vadd.xlane.f32.xlu0 %v1087_v50  ;;  %v766_v54 = vpop.f32.mrf.mxu0 }
 0x5b0   :  { %1941 = vpow2.f32 %v871_v10 }
 0x5b1   :  { %1943 = vrcp.f32 %v877_v5 }
 0x5b2   :  { %1945 = vrcp.f32 %v880_v36 }
 0x5b5   :  { %v1940_v1 = vpop.eup %1939 }
 0x5b6   :  { %v1090_v61 = vsel %vm448_vm12, %v1940_v1, 0.0  ;;  %v2603_v52 = vpop.eup %1941 }
 0x5b7   :  { %1091 = vadd.xlane.f32.xlu1 %v1090_v61  ;;  %v884_v13 = vsel %vm448_vm12, %v2603_v52, 0.0  ;;  %v1944_v62 = vpop.eup %1943  ;;  %v769_v47 = vpop.f32.mrf.mxu0 }
 0x5b8   :  { %v895_v43 = vmul.f32 %v1944_v62, %v2518_v51  ;;  %v1946_v2 = vpop.eup %1945  ;;  %v770_v62 = vadd.f32 %v769_v47, %v2530_v34 }
 0x5b9   :  { %v896_v51 = vmul.f32 %v1946_v2, %v2486_v32 }
 0x5c2   :  { %v1857_v18 = vpop.permute.xlu1 %1856 }
 0x5c3   :  { %v1858_v23 = vunpack.i.l.bf16 %v1857_v18  ;;  %v1859_v5 = vunpack.i.h.bf16 %v1857_v18 }
 0x5d0   :  { %v883_v20 = vpop.xlane.xlu0 %882 }
 0x5d8   :  { %885 = vadd.xlane.f32.xlu2 %v884_v13  ;;  %v767_v13 = vadd.f32 %v766_v54, %v2526_v45 }
 0x60a   :  { %v1080_v56 = vpop.xlane.xlu2 %1079 }
 0x60b   :  { %1947 = vrcp.f32 %v1080_v56 }
 0x60c   :  { %1949 = vrcp.f32 %v883_v20 }
 0x611   :  { %v1948_v63 = vpop.eup %1947 }
 0x612   :  { %v1847_v26 = vpop.permute.xlu2 %1846  ;;  %v1083_v16 = vpop.xlane.xlu1 %1082  ;;  %v1098_v37 = vmul.f32 %v1948_v63, %v2574_v38 }
 0x613   :  { %v1849_v60 = vunpack.i.h.bf16 %v1847_v26  ;;  %v1848_v15 = vunpack.i.l.bf16 %v1847_v26  ;;  %1951 = vrcp.f32 %v1083_v16  ;;  %v1950_v7 = vpop.eup %1949 }
 0x614   :  { %v897_v49 = vmul.f32 %v1950_v7, %v2570_v4 }
 0x615   :  { %959 = vmatpush.msra.mxu3 %v1848_v15  ;;  %1158 = vmatpush.msra.mxu0 %v1849_v60 }
 0x616   :  { %1747 = vmatmul.msk.f32.vlgmr.msra.gmra.mxu3 %vm448_vm12, %v895_v43 }
 0x617   :  { %1159 = vmatpush.msra.mxu0 %v1853_v35 }
 0x619   :  { %1160 = vmatpush.msra.mxu0 %v1854_v21  ;;  %v1952_v30 = vpop.eup %1951 }
 0x61a   :  { %v1086_v27 = vpop.xlane.xlu0 %1085  ;;  %v1099_v11 = vmul.f32 %v1952_v30, %v2580_v12  ;;  %v889_v38 = vpop.xlane.xlu1 %888 }
 0x61b   :  { %1161 = vmatpush.msra.mxu0 %v1858_v23  ;;  %1953 = vrcp.f32 %v1086_v27 }
 0x61d   :  { %1162 = vmatpush.msra.mxu0 %v1859_v5  ;;  %v1863_v5 = vld [vmem:[%s2889_s2 + $0x3] ss:$0 sm:$0xff] }
 0x61e   :  { %1748 = vmatmul.msk.f32.gmra.mxu3 %vm448_vm12, %v896_v51  ;;  %1763 = vmatmul.msk.f32.vlgmr.msra.gmra.mxu0 %vm448_vm12, %v1098_v37 }
 0x621   :  { %v1954_v32 = vpop.eup %1953 }
 0x622   :  { %v1089_v44 = vpop.xlane.xlu0 %1088  ;;  %v1100_v55 = vmul.f32 %v1954_v32, %v2586_v33 }
 0x623   :  { %1955 = vrcp.f32 %v1089_v44 }
 0x626   :  { %1749 = vmatmul.msk.f32.gmra.mxu3 %vm448_vm12, %v897_v49  ;;  %1764 = vmatmul.msk.f32.gmra.mxu0 %vm448_vm12, %v1099_v11 }
 0x629   :  { %v1956_v8 = vpop.eup %1955 }
 0x62a   :  { %v1092_v14 = vpop.xlane.xlu1 %1091  ;;  %v1101_v29 = vmul.f32 %v1956_v8, %v2592_v42  ;;  %v26_v42 = vld [vmem:[%s2888_s1 + $0x60] sm:$0xff] }
 0x62b   :  { %1957 = vrcp.f32 %v1092_v14  ;;  %1214 = vmatpush.msrb.mxu2 %v26_v42 }
 0x62e   :  { %1765 = vmatmul.msk.f32.gmra.mxu0 %vm448_vm12, %v1100_v55 }
 0x631   :  { %v1958_v4 = vpop.eup %1957 }
 0x632   :  { %v1102_v12 = vmul.f32 %v1958_v4, %v1940_v1  ;;  %v764_v1 = vadd.f32 %v763_v22, %v2522_v25 }
 0x636   :  { %1766 = vmatmul.msk.f32.gmra.mxu0 %vm448_vm12, %v1101_v29 }
 0x63e   :  { %1767 = vmatmul.msk.f32.gmra.mxu0 %vm448_vm12, %v1102_v12 }
 0x64b   :  { %v886_v6 = vpop.xlane.xlu2 %885 }
 0x64c   :  { %1959 = vrcp.f32 %v886_v6 }
 0x64d   :  { %1961 = vrcp.f32 %v889_v38 }
 0x652   :  { %v1960_v57 = vpop.eup %1959 }
 0x653   :  { %v898_v9 = vmul.f32 %v1960_v57, %v2603_v52  ;;  %v1962_v33 = vpop.eup %1961 }
 0x654   :  { %v899_v53 = vmul.f32 %v1962_v33, %v2584_v48  ;;  %v772_v48 = vpop.f32.mrf.mxu0 }
 0x655   :  { %1750 = vmatmul.msk.f32.gmra.mxu3 %vm448_vm12, %v898_v9  ;;  %v773_v43 = vadd.f32 %v772_v48, %v2534_v41 }
 0x65c   :  { %v775_v50 = vpop.f32.mrf.mxu0 }
 0x65d   :  { %1751 = vmatmul.msk.f32.gmra.mxu3 %vm448_vm12, %v899_v53  ;;  %v776_v2 = vadd.f32 %v775_v50, %v2539_v59 }
 0x699   :  { %v961_v61 = vpop.f32.mrf.mxu3 }
 0x69a   :  { %v976_v40 = vadd.f32 %v961_v61, %v764_v1 }
 0x69b   :  { %v1164_v10 = vpop.f32.mrf.mxu0 }
 0x69c   :  { %v1179_v52 = vadd.f32 %v1164_v10, %v976_v40 }
 0x69e   :  { %1768 = vmatmul.msk.f32.vlgmr.msrb.gmra.mxu2 %vm115_vm1, %v1179_v52 }
 0x6a1   :  { %v964_v36 = vpop.f32.mrf.mxu3 }
 0x6a2   :  { %v977_v56 = vadd.f32 %v964_v36, %v767_v13 }
 0x6a3   :  { %v1167_v58 = vpop.f32.mrf.mxu0 }
 0x6a4   :  { %v1180_v18 = vadd.f32 %v1167_v58, %v977_v56  ;;  %v33_v58 = vld [vmem:[%s2888_s1 + $0x98] sm:$0xff] }
 0x6a5   :  { %1392 = vmatpush.msrb.mxu3 %v33_v58 }
 0x6a6   :  { %1769 = vmatmul.msk.f32.gmra.mxu2 %vm115_vm1, %v1180_v18  ;;  %v32_v18 = vld [vmem:[%s2888_s1 + $0x90] sm:$0xff] }
 0x6a7   :  { %1393 = vmatpush.msrb.mxu3 %v32_v18 }
 0x6a9   :  { %v967_v26 = vpop.f32.mrf.mxu3 }
 0x6aa   :  { %v978_v60 = vadd.f32 %v967_v26, %v770_v62  ;;  %v31_v62 = vld [vmem:[%s2888_s1 + $0x88] sm:$0xff]  ;;  %v30_v26 = vld [vmem:[%s2888_s1 + $0x80] sm:$0xff] }
 0x6ab   :  { %v1170_v15 = vpop.f32.mrf.mxu0  ;;  %1394 = vmatpush.msrb.mxu3 %v31_v62 }
 0x6ac   :  { %v1181_v25 = vadd.f32 %v1170_v15, %v978_v60 }
 0x6ad   :  { %1395 = vmatpush.msrb.mxu3 %v30_v26 }
 0x6ae   :  { %1770 = vmatmul.msk.f32.gmra.mxu2 %vm115_vm1, %v1181_v25 }
 0x6b3   :  { %v1173_v35 = vpop.f32.mrf.mxu0 }
 0x6bb   :  { %v1176_v23 = vpop.f32.mrf.mxu0 }
 0x6d8   :  { %v970_v20 = vpop.f32.mrf.mxu3 }
 0x6d9   :  { %v979_v21 = vadd.f32 %v970_v20, %v773_v43 }
 0x6db   :  { %v1182_v45 = vadd.f32 %v1173_v35, %v979_v21 }
 0x6dd   :  { %1771 = vmatmul.msk.f32.gmra.mxu2 %vm115_vm1, %v1182_v45 }
 0x6e0   :  { %v973_v16 = vpop.f32.mrf.mxu3 }
 0x6e1   :  { %v980_v63 = vadd.f32 %v973_v16, %v776_v2 }
 0x6e3   :  { %v1183_v34 = vadd.f32 %v1176_v23, %v980_v63 }
 0x6e5   :  { %1772 = vmatmul.msk.f32.gmra.mxu2 %vm115_vm1, %v1183_v34 }
 0x721   :  { %v1216_v37 = vpop.f32.mrf.mxu2 }
 0x722   :  { %v1231_v41 = vadd.f32 %v1216_v37, %v2093_v31 }
 0x724   :  { %v2652_v51 = vadd.f32 %v1863_v5, %v1231_v41 }
 0x726   :  { %v1242_v27 = vsel %vm115_vm1, %v2652_v51, 0.0 }
 0x727   :  { %1243 = vadd.xlane.f32.xlu2 %v1242_v27 }
 0x729   :  { %v1219_v59 = vpop.f32.mrf.mxu2 }
 0x72a   :  { %v1232_v7 = vadd.f32 %v1219_v59, %v2070_v19  ;;  %v2725_v59 = vld [vmem:[%s2889_s2 + $0x4] ss:$0 sm:$0xff] }
 0x72c   :  { %v2657_v30 = vadd.f32 %v1863_v5, %v1232_v7 }
 0x72e   :  { %v1245_v49 = vsel %vm115_vm1, %v2657_v30, 0.0 }
 0x72f   :  { %1246 = vadd.xlane.f32.xlu0 %v1245_v49 }
 0x731   :  { %v1222_v11 = vpop.f32.mrf.mxu2 }
 0x732   :  { %v1233_v38 = vadd.f32 %v1222_v11, %v2068_v17 }
 0x734   :  { %v2662_v44 = vadd.f32 %v1863_v5, %v1233_v38  ;;  %v2730_v38 = vld [vmem:[%s2889_s2 + $0x5] ss:$0 sm:$0xff] }
 0x736   :  { %v1248_v31 = vsel %vm115_vm1, %v2662_v44, 0.0 }
 0x737   :  { %1249 = vadd.xlane.f32.xlu1 %v1248_v31 }
 0x760   :  { %v1225_v32 = vpop.f32.mrf.mxu2 }
 0x761   :  { %v1234_v55 = vadd.f32 %v1225_v32, %v2079_v24 }
 0x763   :  { %v2667_v14 = vadd.f32 %v1863_v5, %v1234_v55 }
 0x765   :  { %v1251_v19 = vsel %vm115_vm1, %v2667_v14, 0.0 }
 0x766   :  { %1252 = vadd.xlane.f32.xlu2 %v1251_v19 }
 0x768   :  { %v1228_v8 = vpop.f32.mrf.mxu2 }
 0x769   :  { %v1235_v29 = vadd.f32 %v1228_v8, %v2086_v28 }
 0x76b   :  { %v2672_v4 = vadd.f32 %v1863_v5, %v1235_v29 }
 0x76d   :  { %v1254_v17 = vsel %vm115_vm1, %v2672_v4, 0.0 }
 0x76e   :  { %1255 = vadd.xlane.f32.xlu0 %v1254_v17 }
 0x79a   :  { %v1244_v12 = vpop.xlane.xlu2 %1243 }
 0x79b   :  { %v1257_v3 = vmul.f32 %v1244_v12, %v2097_v39 }
 0x79d   :  { %v1262_v24 = vsub.f32 %v2652_v51, %v1257_v3 }
 0x79f   :  { %v1267_v6 = vmul.f32 %v1262_v24, %v1262_v24 }
 0x7a1   :  { %v1272_v57 = vsel %vm115_vm1, %v1267_v6, 0.0 }
 0x7a2   :  { %v1247_v9 = vpop.xlane.xlu0 %1246  ;;  %1273 = vadd.xlane.f32.xlu1 %v1272_v57 }
 0x7a3   :  { %v1258_v33 = vmul.f32 %v1247_v9, %v2097_v39 }
 0x7a5   :  { %v2681_v28 = vsub.f32 %v2657_v30, %v1258_v33 }
 0x7a7   :  { %v1268_v53 = vmul.f32 %v2681_v28, %v2681_v28 }
 0x7a9   :  { %v1275_v22 = vsel %vm115_vm1, %v1268_v53, 0.0 }
 0x7aa   :  { %v1250_v54 = vpop.xlane.xlu1 %1249  ;;  %1276 = vadd.xlane.f32.xlu2 %v1275_v22 }
 0x7ab   :  { %v1259_v46 = vmul.f32 %v1250_v54, %v2097_v39 }
 0x7ad   :  { %v2688_v0 = vsub.f32 %v2662_v44, %v1259_v46 }
 0x7af   :  { %v1269_v42 = vmul.f32 %v2688_v0, %v2688_v0 }
 0x7b1   :  { %v1278_v47 = vsel %vm115_vm1, %v1269_v42, 0.0 }
 0x7b2   :  { %1279 = vadd.xlane.f32.xlu0 %v1278_v47 }
 0x7d9   :  { %v1253_v48 = vpop.xlane.xlu2 %1252 }
 0x7da   :  { %v1260_v50 = vmul.f32 %v1253_v48, %v2097_v39 }
 0x7dc   :  { %v2695_v1 = vsub.f32 %v2667_v14, %v1260_v50 }
 0x7de   :  { %v1270_v61 = vmul.f32 %v2695_v1, %v2695_v1 }
 0x7e0   :  { %v1281_v40 = vsel %vm115_vm1, %v1270_v61, 0.0 }
 0x7e1   :  { %1282 = vadd.xlane.f32.xlu1 %v1281_v40  ;;  %v1256_v10 = vpop.xlane.xlu0 %1255 }
 0x7e2   :  { %v1261_v52 = vmul.f32 %v1256_v10, %v2097_v39 }
 0x7e4   :  { %v2702_v13 = vsub.f32 %v2672_v4, %v1261_v52 }
 0x7e6   :  { %v1271_v36 = vmul.f32 %v2702_v13, %v2702_v13 }
 0x7e8   :  { %v1284_v56 = vsel %vm115_vm1, %v1271_v36, 0.0 }
 0x7e9   :  { %1285 = vadd.xlane.f32.xlu2 %v1284_v56 }
 0x815   :  { %v1274_v60 = vpop.xlane.xlu1 %1273 }
 0x816   :  { %v1287_v15 = vmul.f32 %v1274_v60, %v2097_v39 }
 0x818   :  { %v1292_v25 = vadd.f32 1e-05, %v1287_v15 }
 0x81a   :  { %1963 = vrsqrt.f32 %v1292_v25  ;;  %vm1303_vm13 = vweird.f32 %v1292_v25 }
 0x81d   :  { %v1277_v43 = vpop.xlane.xlu2 %1276 }
 0x81e   :  { %v1288_v35 = vmul.f32 %v1277_v43, %v2097_v39 }
 0x820   :  { %v1964_v20 = vpop.eup %1963  ;;  %v1293_v21 = vadd.f32 1e-05, %v1288_v35 }
 0x821   :  { %v1298_v45 = vmul.f32 %v1964_v20, %v1292_v25  ;;  %vm1304_vm12 = vweird.f32 %v1964_v20 }
 0x822   :  { %1965 = vrsqrt.f32 %v1293_v21  ;;  %vm1305_vm14 = vmor %vm1303_vm13, %vm1304_vm12  ;;  %vm1313_vm2 = vweird.f32 %v1293_v21 }
 0x823   :  { %v1299_v2 = vmul.f32 %v1964_v20, %v1298_v45 }
 0x825   :  { %v1300_v16 = vmul.f32 0.5, %v1299_v2  ;;  %v1280_v63 = vpop.xlane.xlu0 %1279 }
 0x826   :  { %v1289_v23 = vmul.f32 %v1280_v63, %v2097_v39 }
 0x827   :  { %v1301_v34 = vsub.f32 1.5, %v1300_v16 }
 0x828   :  { %v1966_v5 = vpop.eup %1965  ;;  %v1294_v37 = vadd.f32 1e-05, %v1289_v23  ;;  %v40_v23 = vld [vmem:[%s2888_s1 + $0xd0] sm:$0xff] }
 0x829   :  { %v1302_v41 = vmul.f32 %v1964_v20, %v1301_v34  ;;  %v1308_v27 = vmul.f32 %v1966_v5, %v1293_v21  ;;  %vm1314_vm15 = vweird.f32 %v1966_v5  ;;  %v38_v34 = vld [vmem:[%s2888_s1 + $0xc0] sm:$0xff] }
 0x82a   :  { %1967 = vrsqrt.f32 %v1294_v37  ;;  %vm1315_vm3 = vmor %vm1313_vm2, %vm1314_vm15  ;;  %vm1323_vm5 = vweird.f32 %v1294_v37 }
 0x82b   :  { %v1306_v7 = vsel %vm1305_vm14, %v1964_v20, %v1302_v41  ;;  %v1309_v49 = vmul.f32 %v1966_v5, %v1308_v27  ;;  %v35_v41 = vld [vmem:[%s2888_s1 + $0xa8] sm:$0xff]  ;;  %v34_v27 = vld [vmem:[%s2888_s1 + $0xa0] sm:$0xff] }
 0x82c   :  { %v1347_v11 = vmul.f32 %v1306_v7, %v1262_v24 }
 0x82d   :  { %v1310_v31 = vmul.f32 0.5, %v1309_v49 }
 0x82e   :  { %v1353_v32 = vmul.f32 %v2725_v59, %v1347_v11 }
 0x82f   :  { %v1311_v55 = vsub.f32 1.5, %v1310_v31 }
 0x830   :  { %v1968_v19 = vpop.eup %1967  ;;  %v1359_v8 = vadd.f32 %v2730_v38, %v1353_v32 }
 0x831   :  { %v1312_v29 = vmul.f32 %v1966_v5, %v1311_v55  ;;  %v1318_v17 = vmul.f32 %v1968_v19, %v1294_v37  ;;  %vm1324_vm4 = vweird.f32 %v1968_v19  ;;  %v36_v37 = vld [vmem:[%s2888_s1 + $0xb0] sm:$0xff] }
 0x832   :  { %1773 = vmatmul.msk.f32.vlgmr.msrb.gmra.mxu3 %vm115_vm1, %v1359_v8  ;;  %vm1325_vm6 = vmor %vm1323_vm5, %vm1324_vm4 }
 0x833   :  { %v1316_v12 = vsel %vm1315_vm3, %v1966_v5, %v1312_v29  ;;  %v1319_v3 = vmul.f32 %v1968_v19, %v1318_v17  ;;  %v37_v5 = vld [vmem:[%s2888_s1 + $0xb8] sm:$0xff] }
 0x834   :  { %v1348_v24 = vmul.f32 %v1316_v12, %v2681_v28 }
 0x835   :  { %v1320_v6 = vmul.f32 0.5, %v1319_v3 }
 0x836   :  { %v1354_v57 = vmul.f32 %v2725_v59, %v1348_v24 }
 0x837   :  { %v1321_v9 = vsub.f32 1.5, %v1320_v6 }
 0x838   :  { %v1360_v33 = vadd.f32 %v2730_v38, %v1354_v57 }
 0x839   :  { %v1322_v53 = vmul.f32 %v1968_v19, %v1321_v9 }
 0x83a   :  { %1774 = vmatmul.msk.f32.gmra.mxu3 %vm115_vm1, %v1360_v33 }
 0x83b   :  { %v1326_v22 = vsel %vm1325_vm6, %v1968_v19, %v1322_v53 }
 0x83c   :  { %v1349_v54 = vmul.f32 %v1326_v22, %v2688_v0 }
 0x83e   :  { %v1355_v46 = vmul.f32 %v2725_v59, %v1349_v54 }
 0x840   :  { %v1361_v42 = vadd.f32 %v2730_v38, %v1355_v46 }
 0x842   :  { %1775 = vmatmul.msk.f32.gmra.mxu3 %vm115_vm1, %v1361_v42 }
 0x854   :  { %v1283_v28 = vpop.xlane.xlu1 %1282 }
 0x855   :  { %v1290_v47 = vmul.f32 %v1283_v28, %v2097_v39 }
 0x857   :  { %v1295_v48 = vadd.f32 1e-05, %v1290_v47 }
 0x859   :  { %1969 = vrsqrt.f32 %v1295_v48  ;;  %vm1333_vm8 = vweird.f32 %v1295_v48 }
 0x85c   :  { %v1286_v50 = vpop.xlane.xlu2 %1285 }
 0x85d   :  { %v1291_v61 = vmul.f32 %v1286_v50, %v2097_v39 }
 0x85f   :  { %v1970_v40 = vpop.eup %1969  ;;  %v1296_v10 = vadd.f32 1e-05, %v1291_v61 }
 0x860   :  { %v1328_v52 = vmul.f32 %v1970_v40, %v1295_v48  ;;  %vm1334_vm7 = vweird.f32 %v1970_v40 }
 0x861   :  { %1971 = vrsqrt.f32 %v1296_v10  ;;  %vm1335_vm9 = vmor %vm1333_vm8, %vm1334_vm7  ;;  %vm1343_vm11 = vweird.f32 %v1296_v10 }
 0x862   :  { %v1329_v36 = vmul.f32 %v1970_v40, %v1328_v52 }
 0x864   :  { %v1330_v0 = vmul.f32 0.5, %v1329_v36 }
 0x866   :  { %v1331_v56 = vsub.f32 1.5, %v1330_v0 }
 0x867   :  { %v1972_v58 = vpop.eup %1971 }
 0x868   :  { %v1332_v18 = vmul.f32 %v1970_v40, %v1331_v56  ;;  %v1338_v62 = vmul.f32 %v1972_v58, %v1296_v10  ;;  %vm1344_vm10 = vweird.f32 %v1972_v58 }
 0x869   :  { %vm1345_vm12 = vmor %vm1343_vm11, %vm1344_vm10 }
 0x86a   :  { %v1336_v26 = vsel %vm1335_vm9, %v1970_v40, %v1332_v18  ;;  %v1339_v60 = vmul.f32 %v1972_v58, %v1338_v62 }
 0x86b   :  { %v1350_v15 = vmul.f32 %v1336_v26, %v2695_v1  ;;  %v41_v1 = vld [vmem:[%s2888_s1 + $0xd8] sm:$0xff] }
 0x86c   :  { %v1340_v25 = vmul.f32 0.5, %v1339_v60  ;;  %1480 = vmatpush.msrb.mxu1 %v41_v1 }
 0x86d   :  { %v1356_v43 = vmul.f32 %v2725_v59, %v1350_v15 }
 0x86e   :  { %v1341_v35 = vsub.f32 1.5, %v1340_v25  ;;  %1481 = vmatpush.msrb.mxu1 %v40_v23 }
 0x86f   :  { %v1362_v20 = vadd.f32 %v2730_v38, %v1356_v43 }
 0x870   :  { %v1342_v21 = vmul.f32 %v1972_v58, %v1341_v35 }
 0x871   :  { %1776 = vmatmul.msk.f32.gmra.mxu3 %vm115_vm1, %v1362_v20 }
 0x872   :  { %v1346_v45 = vsel %vm1345_vm12, %v1972_v58, %v1342_v21 }
 0x873   :  { %v1351_v2 = vmul.f32 %v1346_v45, %v2702_v13  ;;  %v39_v13 = vld [vmem:[%s2888_s1 + $0xc8] sm:$0xff] }
 0x874   :  { %1482 = vmatpush.msrb.mxu1 %v39_v13 }
 0x875   :  { %v1357_v16 = vmul.f32 %v2725_v59, %v1351_v2  ;;  %v1866_v59 = vld [vmem:[%s2889_s2 + $0x6] ss:$0 sm:$0xff] }
 0x876   :  { %1483 = vmatpush.msrb.mxu1 %v38_v34 }
 0x877   :  { %v1363_v63 = vadd.f32 %v2730_v38, %v1357_v16 }
 0x878   :  { %1484 = vmatpush.msrb.mxu1 %v37_v5 }
 0x879   :  { %1777 = vmatmul.msk.f32.gmra.mxu3 %vm115_vm1, %v1363_v63 }
 0x87a   :  { %1485 = vmatpush.msrb.mxu1 %v36_v37 }
 0x87c   :  { %1486 = vmatpush.msrb.mxu1 %v35_v41  ;;  %v1867_v41 = vld [vmem:[%s2889_s2 + $0x7] ss:$0 sm:$0xff] }
 0x87e   :  { %1487 = vmatpush.msrb.mxu1 %v34_v27 }
 0x8b5   :  { %v1397_v7 = vpop.f32.mrf.mxu3 }
 0x8b6   :  { %v1398_v49 = vadd.f32 %v1866_v59, %v1397_v7 }
 0x8b8   :  { %v1412_v11 = vmul.f32 %v1398_v49, %v1398_v49 }
 0x8ba   :  { %v1417_v38 = vmul.f32 %v1412_v11, %v1398_v49 }
 0x8bc   :  { %v1422_v31 = vmul.f32 0.044715, %v1417_v38 }
 0x8bd   :  { %v1400_v32 = vpop.f32.mrf.mxu3 }
 0x8be   :  { %v1427_v55 = vadd.f32 %v1422_v31, %v1398_v49  ;;  %v1401_v19 = vadd.f32 %v1866_v59, %v1400_v32 }
 0x8c0   :  { %v1432_v8 = vmul.f32 0.7978846, %v1427_v55  ;;  %v1413_v29 = vmul.f32 %v1401_v19, %v1401_v19 }
 0x8c2   :  { %1973 = vtanh.f32 %v1432_v8  ;;  %v1418_v17 = vmul.f32 %v1413_v29, %v1401_v19 }
 0x8c4   :  { %v1423_v12 = vmul.f32 0.044715, %v1418_v17 }
 0x8c5   :  { %v1403_v3 = vpop.f32.mrf.mxu3 }
 0x8c6   :  { %v1428_v24 = vadd.f32 %v1423_v12, %v1401_v19  ;;  %v1404_v6 = vadd.f32 %v1866_v59, %v1403_v3 }
 0x8c8   :  { %v1974_v57 = vpop.eup %1973  ;;  %v1414_v9 = vmul.f32 %v1404_v6, %v1404_v6  ;;  %v1433_v33 = vmul.f32 0.7978846, %v1428_v24 }
 0x8c9   :  { %v1442_v53 = vadd.f32 1.0, %v1974_v57 }
 0x8ca   :  { %v1419_v22 = vmul.f32 %v1414_v9, %v1404_v6  ;;  %1975 = vtanh.f32 %v1433_v33 }
 0x8cb   :  { %v1447_v54 = vmul.f32 0.5, %v1442_v53 }
 0x8cc   :  { %v1424_v46 = vmul.f32 0.044715, %v1419_v22 }
 0x8cd   :  { %v1452_v42 = vmul.f32 %v1447_v54, %v1398_v49 }
 0x8ce   :  { %v1429_v28 = vadd.f32 %v1424_v46, %v1404_v6 }
 0x8cf   :  { %1778 = vmatmul.msk.f32.vlgmr.msrb.gmra.mxu1 %vm67_vm0, %v1452_v42 }
 0x8d0   :  { %v1976_v47 = vpop.eup %1975  ;;  %v1434_v48 = vmul.f32 0.7978846, %v1429_v28 }
 0x8d1   :  { %v1443_v50 = vadd.f32 1.0, %v1976_v47 }
 0x8d2   :  { %1977 = vtanh.f32 %v1434_v48 }
 0x8d3   :  { %v1448_v61 = vmul.f32 0.5, %v1443_v50 }
 0x8d5   :  { %v1453_v40 = vmul.f32 %v1448_v61, %v1401_v19 }
 0x8d7   :  { %1779 = vmatmul.msk.f32.gmra.mxu1 %vm67_vm0, %v1453_v40 }
 0x8d8   :  { %v1978_v10 = vpop.eup %1977 }
 0x8d9   :  { %v1444_v52 = vadd.f32 1.0, %v1978_v10 }
 0x8db   :  { %v1449_v36 = vmul.f32 0.5, %v1444_v52 }
 0x8dd   :  { %v1454_v0 = vmul.f32 %v1449_v36, %v1404_v6 }
 0x8df   :  { %1780 = vmatmul.msk.f32.gmra.mxu1 %vm67_vm0, %v1454_v0 }
 0x8f4   :  { %v1406_v56 = vpop.f32.mrf.mxu3 }
 0x8f5   :  { %v1407_v58 = vadd.f32 %v1866_v59, %v1406_v56 }
 0x8f7   :  { %v1415_v18 = vmul.f32 %v1407_v58, %v1407_v58 }
 0x8f9   :  { %v1420_v62 = vmul.f32 %v1415_v18, %v1407_v58 }
 0x8fb   :  { %v1425_v26 = vmul.f32 0.044715, %v1420_v62 }
 0x8fc   :  { %v1409_v60 = vpop.f32.mrf.mxu3 }
 0x8fd   :  { %v1430_v15 = vadd.f32 %v1425_v26, %v1407_v58  ;;  %v1410_v25 = vadd.f32 %v1866_v59, %v1409_v60  ;;  %v45_v60 = vld [vmem:[%s2888_s1 + $0xf8] sm:$0xff] }
 0x8fe   :  { %1665 = vmatpush.msrb.mxu0 %v45_v60 }
 0x8ff   :  { %v1416_v43 = vmul.f32 %v1410_v25, %v1410_v25  ;;  %v1435_v35 = vmul.f32 0.7978846, %v1430_v15  ;;  %v44_v15 = vld [vmem:[%s2888_s1 + $0xf0] sm:$0xff] }
 0x900   :  { %1666 = vmatpush.msrb.mxu0 %v44_v15 }
 0x901   :  { %v1421_v20 = vmul.f32 %v1416_v43, %v1410_v25  ;;  %1979 = vtanh.f32 %v1435_v35  ;;  %v42_v43 = vld [vmem:[%s2888_s1 + $0xe0] sm:$0xff] }
 0x903   :  { %v1426_v21 = vmul.f32 0.044715, %v1421_v20 }
 0x905   :  { %v1431_v45 = vadd.f32 %v1426_v21, %v1410_v25 }
 0x907   :  { %v1980_v2 = vpop.eup %1979  ;;  %v1436_v16 = vmul.f32 0.7978846, %v1431_v45 }
 0x908   :  { %v1445_v63 = vadd.f32 1.0, %v1980_v2 }
 0x909   :  { %1981 = vtanh.f32 %v1436_v16 }
 0x90a   :  { %v1450_v1 = vmul.f32 0.5, %v1445_v63 }
 0x90c   :  { %v1455_v23 = vmul.f32 %v1450_v1, %v1407_v58 }
 0x90e   :  { %1781 = vmatmul.msk.f32.gmra.mxu1 %vm67_vm0, %v1455_v23 }
 0x90f   :  { %v1982_v13 = vpop.eup %1981 }
 0x910   :  { %v1446_v34 = vadd.f32 1.0, %v1982_v13 }
 0x912   :  { %v1451_v5 = vmul.f32 0.5, %v1446_v34 }
 0x914   :  { %v1456_v37 = vmul.f32 %v1451_v5, %v1410_v25  ;;  %v43_v25 = vld [vmem:[%s2888_s1 + $0xe8] sm:$0xff] }
 0x915   :  { %1667 = vmatpush.msrb.mxu0 %v43_v25 }
 0x916   :  { %1782 = vmatmul.msk.f32.gmra.mxu1 %vm67_vm0, %v1456_v37 }
 0x917   :  { %1668 = vmatpush.msrb.mxu0 %v42_v43 }
 0x94c   :  { %v1489_v27 = vpop.f32.mrf.mxu1 }
 0x94d   :  { %v1504_v59 = vadd.f32 %v1489_v27, %v2652_v51 }
 0x94f   :  { %v1510_v7 = vadd.f32 %v1867_v41, %v1504_v59 }
 0x951   :  { %v1515_v49 = vsel %vm115_vm1, %v1510_v7, 0.0 }
 0x952   :  { %1516 = vadd.xlane.f32.xlu0 %v1515_v49  ;;  %v2842_v49 = vld [vmem:[%s2889_s2 + $0x8] ss:$0 sm:$0xff] }
 0x954   :  { %v1492_v11 = vpop.f32.mrf.mxu1 }
 0x955   :  { %v1505_v38 = vadd.f32 %v1492_v11, %v2657_v30 }
 0x957   :  { %v1511_v31 = vadd.f32 %v1867_v41, %v1505_v38 }
 0x959   :  { %v1518_v32 = vsel %vm115_vm1, %v1511_v31, 0.0 }
 0x95a   :  { %1519 = vadd.xlane.f32.xlu1 %v1518_v32  ;;  %v2847_v32 = vld [vmem:[%s2889_s2 + $0x9] ss:$0 sm:$0xff] }
 0x95c   :  { %v1495_v55 = vpop.f32.mrf.mxu1 }
 0x95d   :  { %v1506_v19 = vadd.f32 %v1495_v55, %v2662_v44 }
 0x95f   :  { %v1512_v8 = vadd.f32 %v1867_v41, %v1506_v19 }
 0x961   :  { %v1521_v29 = vsel %vm115_vm1, %v1512_v8, 0.0 }
 0x962   :  { %1522 = vadd.xlane.f32.xlu2 %v1521_v29 }
 0x98b   :  { %v1498_v17 = vpop.f32.mrf.mxu1 }
 0x98c   :  { %v1507_v51 = vadd.f32 %v1498_v17, %v2667_v14 }
 0x98e   :  { %v1513_v12 = vadd.f32 %v1867_v41, %v1507_v51 }
 0x990   :  { %v1524_v3 = vsel %vm115_vm1, %v1513_v12, 0.0 }
 0x991   :  { %1525 = vadd.xlane.f32.xlu0 %v1524_v3 }
 0x993   :  { %v1501_v24 = vpop.f32.mrf.mxu1 }
 0x994   :  { %v1508_v30 = vadd.f32 %v1501_v24, %v2672_v4 }
 0x996   :  { %v1514_v6 = vadd.f32 %v1867_v41, %v1508_v30 }
 0x998   :  { %v1527_v57 = vsel %vm115_vm1, %v1514_v6, 0.0 }
 0x999   :  { %1528 = vadd.xlane.f32.xlu1 %v1527_v57 }
 0x9c5   :  { %v1517_v9 = vpop.xlane.xlu0 %1516 }
 0x9c6   :  { %v1530_v44 = vmul.f32 %v1517_v9, %v2097_v39 }
 0x9c8   :  { %v1535_v33 = vsub.f32 %v1510_v7, %v1530_v44 }
 0x9ca   :  { %v1540_v53 = vmul.f32 %v1535_v33, %v1535_v33 }
 0x9cc   :  { %v1545_v22 = vsel %vm115_vm1, %v1540_v53, 0.0 }
 0x9cd   :  { %v1520_v54 = vpop.xlane.xlu1 %1519  ;;  %1546 = vadd.xlane.f32.xlu2 %v1545_v22 }
 0x9ce   :  { %v1531_v14 = vmul.f32 %v1520_v54, %v2097_v39 }
 0x9d0   :  { %v2801_v46 = vsub.f32 %v1511_v31, %v1531_v14 }
 0x9d2   :  { %v1541_v4 = vmul.f32 %v2801_v46, %v2801_v46 }
 0x9d4   :  { %v1548_v42 = vsel %vm115_vm1, %v1541_v4, 0.0 }
 0x9d5   :  { %v1523_v28 = vpop.xlane.xlu2 %1522  ;;  %1549 = vadd.xlane.f32.xlu0 %v1548_v42 }
 0x9d6   :  { %v1532_v47 = vmul.f32 %v1523_v28, %v2097_v39 }
 0x9d8   :  { %v2807_v48 = vsub.f32 %v1512_v8, %v1532_v47 }
 0x9da   :  { %v1542_v50 = vmul.f32 %v2807_v48, %v2807_v48 }
 0x9dc   :  { %v1551_v61 = vsel %vm115_vm1, %v1542_v50, 0.0 }
 0x9dd   :  { %1552 = vadd.xlane.f32.xlu1 %v1551_v61 }
 0xa04   :  { %v1526_v40 = vpop.xlane.xlu0 %1525 }
 0xa05   :  { %v1533_v10 = vmul.f32 %v1526_v40, %v2097_v39 }
 0xa07   :  { %v2813_v52 = vsub.f32 %v1513_v12, %v1533_v10 }
 0xa09   :  { %v1543_v36 = vmul.f32 %v2813_v52, %v2813_v52 }
 0xa0b   :  { %v1554_v0 = vsel %vm115_vm1, %v1543_v36, 0.0 }
 0xa0c   :  { %v1529_v56 = vpop.xlane.xlu1 %1528  ;;  %1555 = vadd.xlane.f32.xlu2 %v1554_v0 }
 0xa0d   :  { %v1534_v58 = vmul.f32 %v1529_v56, %v2097_v39 }
 0xa0f   :  { %v2819_v18 = vsub.f32 %v1514_v6, %v1534_v58 }
 0xa11   :  { %v1544_v62 = vmul.f32 %v2819_v18, %v2819_v18 }
 0xa13   :  { %v1557_v26 = vsel %vm115_vm1, %v1544_v62, 0.0 }
 0xa14   :  { %1558 = vadd.xlane.f32.xlu0 %v1557_v26 }
 0xa40   :  { %v1547_v35 = vpop.xlane.xlu2 %1546 }
 0xa41   :  { %v1560_v20 = vmul.f32 %v1547_v35, %v2097_v39 }
 0xa43   :  { %v1565_v21 = vadd.f32 1e-05, %v1560_v20 }
 0xa45   :  { %1983 = vrsqrt.f32 %v1565_v21  ;;  %vm1576_vm13 = vweird.f32 %v1565_v21 }
 0xa48   :  { %v1550_v45 = vpop.xlane.xlu0 %1549 }
 0xa49   :  { %v1561_v2 = vmul.f32 %v1550_v45, %v2097_v39 }
 0xa4b   :  { %v1984_v16 = vpop.eup %1983  ;;  %v1566_v63 = vadd.f32 1e-05, %v1561_v2 }
 0xa4c   :  { %v1571_v1 = vmul.f32 %v1984_v16, %v1565_v21  ;;  %vm1577_vm0 = vweird.f32 %v1984_v16 }
 0xa4d   :  { %1985 = vrsqrt.f32 %v1566_v63  ;;  %vm1578_vm14 = vmor %vm1576_vm13, %vm1577_vm0  ;;  %vm1586_vm2 = vweird.f32 %v1566_v63 }
 0xa4e   :  { %v1572_v23 = vmul.f32 %v1984_v16, %v1571_v1 }
 0xa50   :  { %v1573_v13 = vmul.f32 0.5, %v1572_v23  ;;  %v1553_v34 = vpop.xlane.xlu1 %1552 }
 0xa51   :  { %v1562_v5 = vmul.f32 %v1553_v34, %v2097_v39 }
 0xa52   :  { %v1574_v37 = vsub.f32 1.5, %v1573_v13 }
 0xa53   :  { %v1986_v41 = vpop.eup %1985  ;;  %v1567_v27 = vadd.f32 1e-05, %v1562_v5 }
 0xa54   :  { %v1575_v59 = vmul.f32 %v1984_v16, %v1574_v37  ;;  %v1581_v7 = vmul.f32 %v1986_v41, %v1566_v63  ;;  %vm1587_vm15 = vweird.f32 %v1986_v41 }
 0xa55   :  { %1987 = vrsqrt.f32 %v1567_v27  ;;  %vm1588_vm3 = vmor %vm1586_vm2, %vm1587_vm15  ;;  %vm1596_vm5 = vweird.f32 %v1567_v27 }
 0xa56   :  { %v1579_v11 = vsel %vm1578_vm14, %v1984_v16, %v1575_v59  ;;  %v1582_v38 = vmul.f32 %v1986_v41, %v1581_v7 }
 0xa57   :  { %v1620_v31 = vmul.f32 %v1579_v11, %v1535_v33 }
 0xa58   :  { %v1583_v55 = vmul.f32 0.5, %v1582_v38 }
 0xa59   :  { %v1626_v19 = vmul.f32 %v2842_v49, %v1620_v31 }
 0xa5a   :  { %v1584_v8 = vsub.f32 1.5, %v1583_v55 }
 0xa5b   :  { %v1988_v29 = vpop.eup %1987  ;;  %v1632_v17 = vadd.f32 %v2847_v32, %v1626_v19 }
 0xa5c   :  { %v1585_v51 = vmul.f32 %v1986_v41, %v1584_v8  ;;  %v1591_v12 = vmul.f32 %v1988_v29, %v1567_v27  ;;  %vm1597_vm4 = vweird.f32 %v1988_v29 }
 0xa5d   :  { %1783 = vmatmul.msk.f32.vlgmr.msrb.gmra.mxu0 %vm115_vm1, %v1632_v17  ;;  %vm1598_vm6 = vmor %vm1596_vm5, %vm1597_vm4 }
 0xa5e   :  { %v1589_v3 = vsel %vm1588_vm3, %v1986_v41, %v1585_v51  ;;  %v1592_v24 = vmul.f32 %v1988_v29, %v1591_v12 }
 0xa5f   :  { %v1621_v30 = vmul.f32 %v1589_v3, %v2801_v46 }
 0xa60   :  { %v1593_v6 = vmul.f32 0.5, %v1592_v24 }
 0xa61   :  { %v1627_v57 = vmul.f32 %v2842_v49, %v1621_v30 }
 0xa62   :  { %v1594_v9 = vsub.f32 1.5, %v1593_v6 }
 0xa63   :  { %v1633_v44 = vadd.f32 %v2847_v32, %v1627_v57 }
 0xa64   :  { %v1595_v33 = vmul.f32 %v1988_v29, %v1594_v9 }
 0xa65   :  { %1784 = vmatmul.msk.f32.gmra.mxu0 %vm115_vm1, %v1633_v44 }
 0xa66   :  { %v1599_v53 = vsel %vm1598_vm6, %v1988_v29, %v1595_v33 }
 0xa67   :  { %v1622_v22 = vmul.f32 %v1599_v53, %v2807_v48 }
 0xa69   :  { %v1628_v54 = vmul.f32 %v2842_v49, %v1622_v22 }
 0xa6b   :  { %v1634_v14 = vadd.f32 %v2847_v32, %v1628_v54 }
 0xa6d   :  { %1785 = vmatmul.msk.f32.gmra.mxu0 %vm115_vm1, %v1634_v14 }
 0xa7f   :  { %v1556_v46 = vpop.xlane.xlu2 %1555 }
 0xa80   :  { %v1563_v4 = vmul.f32 %v1556_v46, %v2097_v39 }
 0xa82   :  { %v1568_v42 = vadd.f32 1e-05, %v1563_v4 }
 0xa84   :  { %1989 = vrsqrt.f32 %v1568_v42  ;;  %vm1606_vm8 = vweird.f32 %v1568_v42 }
 0xa87   :  { %v1559_v28 = vpop.xlane.xlu0 %1558 }
 0xa88   :  { %v1564_v47 = vmul.f32 %v1559_v28, %v2097_v39 }
 0xa8a   :  { %v1990_v50 = vpop.eup %1989  ;;  %v1569_v61 = vadd.f32 1e-05, %v1564_v47 }
 0xa8b   :  { %v1601_v40 = vmul.f32 %v1990_v50, %v1568_v42  ;;  %vm1607_vm7 = vweird.f32 %v1990_v50 }
 0xa8c   :  { %1991 = vrsqrt.f32 %v1569_v61  ;;  %vm1608_vm9 = vmor %vm1606_vm8, %vm1607_vm7  ;;  %vm1616_vm11 = vweird.f32 %v1569_v61 }
 0xa8d   :  { %v1602_v10 = vmul.f32 %v1990_v50, %v1601_v40 }
 0xa8f   :  { %v1603_v48 = vmul.f32 0.5, %v1602_v10 }
 0xa91   :  { %v1604_v36 = vsub.f32 1.5, %v1603_v48 }
 0xa92   :  { %v1992_v0 = vpop.eup %1991 }
 0xa93   :  { %v1605_v56 = vmul.f32 %v1990_v50, %v1604_v36  ;;  %v1611_v58 = vmul.f32 %v1992_v0, %v1569_v61  ;;  %vm1617_vm10 = vweird.f32 %v1992_v0 }
 0xa94   :  { %vm1618_vm12 = vmor %vm1616_vm11, %vm1617_vm10 }
 0xa95   :  { %v1609_v62 = vsel %vm1608_vm9, %v1990_v50, %v1605_v56  ;;  %v1612_v26 = vmul.f32 %v1992_v0, %v1611_v58 }
 0xa96   :  { %v1623_v60 = vmul.f32 %v1609_v62, %v2813_v52  ;;  %v1870_v52 = vld [vmem:[%s2889_s2 + $0xa] ss:$0 sm:$0xff] }
 0xa97   :  { %v1613_v15 = vmul.f32 0.5, %v1612_v26 }
 0xa98   :  { %v1629_v39 = vmul.f32 %v2842_v49, %v1623_v60 }
 0xa99   :  { %v1614_v25 = vsub.f32 1.5, %v1613_v15 }
 0xa9a   :  { %v1635_v43 = vadd.f32 %v2847_v32, %v1629_v39 }
 0xa9b   :  { %v1615_v35 = vmul.f32 %v1992_v0, %v1614_v25 }
 0xa9c   :  { %1786 = vmatmul.msk.f32.gmra.mxu0 %vm115_vm1, %v1635_v43 }
 0xa9d   :  { %v1619_v20 = vsel %vm1618_vm12, %v1992_v0, %v1615_v35 }
 0xa9e   :  { %v1624_v21 = vmul.f32 %v1619_v20, %v2819_v18 }
 0xaa0   :  { %v1630_v45 = vmul.f32 %v2842_v49, %v1624_v21 }
 0xaa2   :  { %v1636_v2 = vadd.f32 %v2847_v32, %v1630_v45 }
 0xaa4   :  { %1787 = vmatmul.msk.f32.gmra.mxu0 %vm115_vm1, %v1636_v2 }
 0xada   :  { %v1670_v16 = vpop.f32.mrf.mxu0 }
 0xadb   :  { %v1671_v63 = vadd.f32 %v1870_v52, %v1670_v16 }
 0xadd   :  { %1685 = vst [vmem:[%s2891_s3] sm:$0xff] %v1671_v63 }
 0xae2   :  { %v1673_v1 = vpop.f32.mrf.mxu0 }
 0xae3   :  { %v1674_v23 = vadd.f32 %v1870_v52, %v1673_v1 }
 0xae5   :  { %1686 = vst [vmem:[%s2891_s3 + $0x8] sm:$0xff] %v1674_v23 }
 0xaea   :  { %v1676_v18 = vpop.f32.mrf.mxu0 }
 0xaeb   :  { %v1677_v13 = vadd.f32 %v1870_v52, %v1676_v18 }
 0xaed   :  { %1687 = vst [vmem:[%s2891_s3 + $0x10] sm:$0xff] %v1677_v13 }
 0xb19   :  { %v1679_v34 = vpop.f32.mrf.mxu0 }
 0xb1a   :  { %v1680_v5 = vadd.f32 %v1870_v52, %v1679_v34 }
 0xb1c   :  { %1688 = vst [vmem:[%s2891_s3 + $0x18] sm:$0xff] %v1680_v5 }
 0xb21   :  { %v1682_v37 = vpop.f32.mrf.mxu0 }
 0xb22   :  { %v1683_v41 = vadd.f32 %v1870_v52, %v1682_v37 }
 0xb24   :  { %1689 = vst [vmem:[%s2891_s3 + $0x20] sm:$0xff] %v1683_v41 }

</bundles_post_ra>
